<compile_context>
chip_gen: v5e
topology: v5e:2x2
jax: 0.10.0
libtpu: 0.0.40
codegen_flags: <defaults>
</compile_context>

<pallas_src>
import jax
import jax.numpy as jnp
from jax import lax
from jax.experimental import pallas as pl
from jax.experimental.pallas import tpu as pltpu


def temporal_gnn_kernel(x_ref, a_ref,
                        w1_ref, b1_ref, w2_ref, b2_ref,
                        wih_ref, whh_ref, bih_ref, bhh_ref,
                        wlin_ref, blin_ref,
                        out_ref):
    H = whh_ref.shape[0]          # hidden size (whh is (H, 4H), bf16)
    N = x_ref.shape[0]            # number of nodes == LSTM sequence length

    a_bf = a_ref[...]                                            # bf16 (N, N)

    # ---- GCN layer 1: relu((A_hat @ X) @ W1 + b1)  (reassociated: F << H) ----
    ax = jnp.dot(a_bf, x_ref[...],
                 preferred_element_type=jnp.float32)             # (N, F) f32
    h1 = jnp.dot(ax.astype(jnp.bfloat16), w1_ref[...],
                 preferred_element_type=jnp.float32) + b1_ref[...]
    h1 = jnp.maximum(h1, 0.0)
    # dropout(p=0.2) is the identity in eval mode.
    # TODO(synk): training-mode stochastic dropout mask not implemented.

    # ---- GCN layer 2: relu(A_hat @ (H1 @ W2) + b2) ----
    xw2 = jnp.dot(h1.astype(jnp.bfloat16), w2_ref[...],
                  preferred_element_type=jnp.float32)            # (N, H) f32
    h2 = jnp.dot(a_bf, xw2.astype(jnp.bfloat16),
                 preferred_element_type=jnp.float32) + b2_ref[...]
    feat = jnp.maximum(h2, 0.0)                                  # (N, H) f32

    # ---- Hoisted LSTM input projection (bf16 MXU operands, f32 accum) ----
    bias = bih_ref[...] + bhh_ref[...]                           # (1, 4H) f32
    xg = jnp.dot(feat.astype(jnp.bfloat16), wih_ref[...],
                 preferred_element_type=jnp.float32) + bias      # (N, 4H) f32, vreg-resident

    # ---- LSTM recurrence: W_hh loaded once, fully unrolled, vreg-resident ----
    whh = whh_ref[...]                                           # (H, 4H) bf16, single load
    h = jnp.zeros((1, H), jnp.float32)
    c = jnp.zeros((1, H), jnp.float32)
    h_rows = []
    for t in range(N):                                           # static unroll (N small)
        gates = xg[t:t + 1, :] + jnp.dot(h.astype(jnp.bfloat16), whh,
                                         preferred_element_type=jnp.float32)  # (1, 4H) f32
        # Activate the full 4H-lane vector once (EUP), then slice lanes.
        sg = jax.nn.sigmoid(gates)
        tg = jnp.tanh(gates)
        i_g = sg[:, 0 * H:1 * H]
        f_g = sg[:, 1 * H:2 * H]
        g_g = tg[:, 2 * H:3 * H]
        o_g = sg[:, 3 * H:4 * H]
        c = f_g * c + i_g * g_g
        h = o_g * jnp.tanh(c)
        h_rows.append(h)
    hseq = jnp.concatenate(h_rows, axis=0)                       # (N, H) f32, vreg-resident

    # ---- Final linear (output padded to 128 lanes -> unmasked full-vreg store) ----
    out_ref[...] = (jnp.dot(hseq, wlin_ref[...],
                            preferred_element_type=jnp.float32)
                    + blin_ref[...])


def temporal_gnn_forward(x, a_hat, params):
    N, _ = x.shape
    H = params["w_hh_t"].shape[0]
    OUT = params["w_lin_t"].shape[1]
    OUT_PAD = max(128, ((OUT + 127) // 128) * 128)   # lane-dense output width

    # Pad the final Linear with zero columns (lane-dense store in-kernel).
    wlin_pad = jnp.zeros((H, OUT_PAD), jnp.float32).at[:, :OUT].set(params["w_lin_t"])
    blin_pad = jnp.zeros((1, OUT_PAD), jnp.float32).at[:, :OUT].set(params["b_lin"])

    args = (x.astype(jnp.bfloat16), a_hat.astype(jnp.bfloat16),
            params["w1_t"].astype(jnp.bfloat16), params["b1"],
            params["w2_t"].astype(jnp.bfloat16), params["b2"],
            params["w_ih_t"].astype(jnp.bfloat16),   # bf16 MXU operand
            params["w_hh_t"].astype(jnp.bfloat16),   # bf16 MXU operand
            params["b_ih"], params["b_hh"],
            wlin_pad, blin_pad)

    out_padded = pl.pallas_call(
        temporal_gnn_kernel,
        out_shape=jax.ShapeDtypeStruct((N, OUT_PAD), jnp.float32),
        in_specs=[pl.BlockSpec(memory_space=pltpu.MemorySpace.VMEM)] * len(args),
        out_specs=pl.BlockSpec(memory_space=pltpu.MemorySpace.VMEM),
    )(*args)
    # TODO(synk): for large N the dense (N,N) a_hat should be gridded/tiled over
    # node-row blocks (derive tiles against v7x's 64 MiB VMEM) with a "parallel"
    # grid axis for the GCN phase; at N=16 the whole-array-resident design wins.
    return out_padded[:, :OUT]


def gcn_norm_dense(edge_index, num_nodes):
    """Dense D^{-1/2} (A + I) D^{-1/2}, PyG GCNConv normalization (glue, plain JAX)."""
    src, dst = edge_index[0], edge_index[1]
    a = jnp.zeros((num_nodes, num_nodes), jnp.float32)
    a = a.at[dst, src].add(1.0)                   # A[i, j] = 1 for edge j -> i
    # add_remaining_self_loops semantics: only add a self-loop where none exists.
    idx = jnp.arange(num_nodes)
    diag = jnp.diagonal(a)
    a = a.at[idx, idx].set(jnp.where(diag > 0, diag, 1.0))
    deg = a.sum(axis=1)
    d_inv_sqrt = jnp.where(deg > 0, lax.rsqrt(deg), 0.0)
    return d_inv_sqrt[:, None] * a * d_inv_sqrt[None, :]


if __name__ == "__main__":
    N, F, H, OUT = 16, 4, 32, 8   # nodes, node_features, hidden_channels, output_features

    key = jax.random.PRNGKey(0)
    ks = jax.random.split(key, 10)

    # deterministic inputs
    x = jax.random.normal(ks[0], (N, F), jnp.float32)
    src = jnp.arange(N, dtype=jnp.int32)
    dst = (src + 1) % N
    edge_index = jnp.stack([jnp.concatenate([src, dst]),
                            jnp.concatenate([dst, src])])   # undirected ring, (2, 2N)
    a_hat = gcn_norm_dense(edge_index, N)

    def u(k, shape, fan_in):
        bound = 1.0 / float(fan_in) ** 0.5
        return jax.random.uniform(k, shape, jnp.float32, -bound, bound)

    # deterministic synthetic parameters (shapes follow the PyTorch module)
    params = {
        "w1_t":   u(ks[1], (F, H), F),            # GCNConv1 weight, transposed
        "b1":     jnp.zeros((1, H), jnp.float32),
        "w2_t":   u(ks[2], (H, H), H),            # GCNConv2 weight, transposed
        "b2":     jnp.zeros((1, H), jnp.float32),
        "w_ih_t": u(ks[3], (H, 4 * H), H),        # LSTM weight_ih_l0^T
        "w_hh_t": u(ks[4], (H, 4 * H), H),        # LSTM weight_hh_l0^T
        "b_ih":   u(ks[5], (1, 4 * H), H),
        "b_hh":   u(ks[6], (1, 4 * H), H),
        "w_lin_t": u(ks[7], (H, OUT), H),         # Linear weight^T
        "b_lin":  u(ks[8], (1, OUT), H),
    }

    out = temporal_gnn_forward(x, a_hat, params)
    jax.block_until_ready(out)
    assert out.shape == (N, OUT) and out.dtype == jnp.float32
    print("KERNEL_OK")
</pallas_src>

<mosaic_0001>
module attributes {stable_mosaic.version = 11 : i64} {
  func.func @temporal_gnn_kernel(%arg0: memref<16x4xbf16, #tpu.memory_space<vmem>>, %arg1: memref<16x16xbf16, #tpu.memory_space<vmem>>, %arg2: memref<4x32xbf16, #tpu.memory_space<vmem>>, %arg3: memref<1x32xf32, #tpu.memory_space<vmem>>, %arg4: memref<32x32xbf16, #tpu.memory_space<vmem>>, %arg5: memref<1x32xf32, #tpu.memory_space<vmem>>, %arg6: memref<32x128xbf16, #tpu.memory_space<vmem>>, %arg7: memref<32x128xbf16, #tpu.memory_space<vmem>>, %arg8: memref<1x128xf32, #tpu.memory_space<vmem>>, %arg9: memref<1x128xf32, #tpu.memory_space<vmem>>, %arg10: memref<32x128xf32, #tpu.memory_space<vmem>>, %arg11: memref<1x128xf32, #tpu.memory_space<vmem>>, %arg12: memref<16x128xf32, #tpu.memory_space<vmem>>) attributes {dimension_semantics = [], scalar_prefetch = 0 : i64, scratch_operands = 0 : i64, tpu.core_type = #tpu.core_type<tc>} {
    %c0 = arith.constant 0 : index
    %c0_0 = arith.constant 0 : index
    %0 = vector.load %arg1[%c0, %c0_0] : memref<16x16xbf16, #tpu.memory_space<vmem>>, vector<16x16xbf16>
    %c0_1 = arith.constant 0 : index
    %c0_2 = arith.constant 0 : index
    %1 = vector.load %arg0[%c0_1, %c0_2] : memref<16x4xbf16, #tpu.memory_space<vmem>>, vector<16x4xbf16>
    %cst = arith.constant dense<0.000000e+00> : vector<16x4xf32>
    %2 = tpu.matmul %0, %1, %cst {dimension_numbers = #tpu.dot_dimension_numbers<[1], [0], [0], [1], [0, 0, 1, 1], [], []>} : vector<16x16xbf16>, vector<16x4xbf16>, vector<16x4xf32> -> vector<16x4xf32>
    %3 = arith.truncf %2 : vector<16x4xf32> to vector<16x4xbf16>
    %c0_3 = arith.constant 0 : index
    %c0_4 = arith.constant 0 : index
    %4 = vector.load %arg2[%c0_3, %c0_4] : memref<4x32xbf16, #tpu.memory_space<vmem>>, vector<4x32xbf16>
    %cst_5 = arith.constant dense<0.000000e+00> : vector<16x32xf32>
    %5 = tpu.matmul %3, %4, %cst_5 {dimension_numbers = #tpu.dot_dimension_numbers<[1], [0], [0], [1], [0, 0, 1, 1], [], []>} : vector<16x4xbf16>, vector<4x32xbf16>, vector<16x32xf32> -> vector<16x32xf32>
    %c0_6 = arith.constant 0 : index
    %c0_7 = arith.constant 0 : index
    %6 = vector.load %arg3[%c0_6, %c0_7] : memref<1x32xf32, #tpu.memory_space<vmem>>, vector<1x32xf32>
    %7 = vector.broadcast %6 : vector<1x32xf32> to vector<16x32xf32>
    %8 = arith.addf %5, %7 : vector<16x32xf32>
    %cst_8 = arith.constant 0.000000e+00 : f32
    %9 = vector.broadcast %cst_8 : f32 to vector<16x32xf32>
    %10 = arith.maximumf %8, %9 : vector<16x32xf32>
    %11 = arith.truncf %10 : vector<16x32xf32> to vector<16x32xbf16>
    %c0_9 = arith.constant 0 : index
    %c0_10 = arith.constant 0 : index
    %12 = vector.load %arg4[%c0_9, %c0_10] : memref<32x32xbf16, #tpu.memory_space<vmem>>, vector<32x32xbf16>
    %cst_11 = arith.constant dense<0.000000e+00> : vector<16x32xf32>
    %13 = tpu.matmul %11, %12, %cst_11 {dimension_numbers = #tpu.dot_dimension_numbers<[1], [0], [0], [1], [0, 0, 1, 1], [], []>} : vector<16x32xbf16>, vector<32x32xbf16>, vector<16x32xf32> -> vector<16x32xf32>
    %14 = arith.truncf %13 : vector<16x32xf32> to vector<16x32xbf16>
    %cst_12 = arith.constant dense<0.000000e+00> : vector<16x32xf32>
    %15 = tpu.matmul %0, %14, %cst_12 {dimension_numbers = #tpu.dot_dimension_numbers<[1], [0], [0], [1], [0, 0, 1, 1], [], []>} : vector<16x16xbf16>, vector<16x32xbf16>, vector<16x32xf32> -> vector<16x32xf32>
    %c0_13 = arith.constant 0 : index
    %c0_14 = arith.constant 0 : index
    %16 = vector.load %arg5[%c0_13, %c0_14] : memref<1x32xf32, #tpu.memory_space<vmem>>, vector<1x32xf32>
    %17 = vector.broadcast %16 : vector<1x32xf32> to vector<16x32xf32>
    %18 = arith.addf %15, %17 : vector<16x32xf32>
    %cst_15 = arith.constant 0.000000e+00 : f32
    %19 = vector.broadcast %cst_15 : f32 to vector<16x32xf32>
    %20 = arith.maximumf %18, %19 : vector<16x32xf32>
    %c0_16 = arith.constant 0 : index
    %c0_17 = arith.constant 0 : index
    %21 = vector.load %arg8[%c0_16, %c0_17] : memref<1x128xf32, #tpu.memory_space<vmem>>, vector<1x128xf32>
    %c0_18 = arith.constant 0 : index
    %c0_19 = arith.constant 0 : index
    %22 = vector.load %arg9[%c0_18, %c0_19] : memref<1x128xf32, #tpu.memory_space<vmem>>, vector<1x128xf32>
    %23 = arith.addf %21, %22 : vector<1x128xf32>
    %24 = arith.truncf %20 : vector<16x32xf32> to vector<16x32xbf16>
    %c0_20 = arith.constant 0 : index
    %c0_21 = arith.constant 0 : index
    %25 = vector.load %arg6[%c0_20, %c0_21] : memref<32x128xbf16, #tpu.memory_space<vmem>>, vector<32x128xbf16>
    %cst_22 = arith.constant dense<0.000000e+00> : vector<16x128xf32>
    %26 = tpu.matmul %24, %25, %cst_22 {dimension_numbers = #tpu.dot_dimension_numbers<[1], [0], [0], [1], [0, 0, 1, 1], [], []>} : vector<16x32xbf16>, vector<32x128xbf16>, vector<16x128xf32> -> vector<16x128xf32>
    %27 = vector.broadcast %23 : vector<1x128xf32> to vector<16x128xf32>
    %28 = arith.addf %26, %27 : vector<16x128xf32>
    %c0_23 = arith.constant 0 : index
    %c0_24 = arith.constant 0 : index
    %29 = vector.load %arg7[%c0_23, %c0_24] : memref<32x128xbf16, #tpu.memory_space<vmem>>, vector<32x128xbf16>
    %cst_25 = arith.constant 0.000000e+00 : f32
    %30 = vector.broadcast %cst_25 : f32 to vector<1x32xf32>
    %cst_26 = arith.constant 0.000000e+00 : f32
    %31 = vector.broadcast %cst_26 : f32 to vector<1x32xf32>
    %32 = vector.extract_strided_slice %28 {offsets = [0, 0], sizes = [1, 128], strides = [1, 1]} : vector<16x128xf32> to vector<1x128xf32>
    %33 = arith.truncf %30 : vector<1x32xf32> to vector<1x32xbf16>
    %cst_27 = arith.constant dense<0.000000e+00> : vector<1x128xf32>
    %34 = tpu.matmul %33, %29, %cst_27 {dimension_numbers = #tpu.dot_dimension_numbers<[1], [0], [0], [1], [0, 0, 1, 1], [], []>} : vector<1x32xbf16>, vector<32x128xbf16>, vector<1x128xf32> -> vector<1x128xf32>
    %35 = arith.addf %32, %34 : vector<1x128xf32>
    %36 = arith.negf %35 : vector<1x128xf32>
    %37 = math.exp %36 : vector<1x128xf32>
    %cst_28 = arith.constant 1.000000e+00 : f32
    %38 = vector.broadcast %cst_28 : f32 to vector<1x128xf32>
    %39 = arith.addf %38, %37 : vector<1x128xf32>
    %40 = arith.divf %38, %39 : vector<1x128xf32>
    %41 = math.tanh %35 : vector<1x128xf32>
    %42 = vector.extract_strided_slice %40 {offsets = [0, 0], sizes = [1, 32], strides = [1, 1]} : vector<1x128xf32> to vector<1x32xf32>
    %43 = vector.extract_strided_slice %40 {offsets = [0, 32], sizes = [1, 32], strides = [1, 1]} : vector<1x128xf32> to vector<1x32xf32>
    %44 = vector.extract_strided_slice %41 {offsets = [0, 64], sizes = [1, 32], strides = [1, 1]} : vector<1x128xf32> to vector<1x32xf32>
    %45 = vector.extract_strided_slice %40 {offsets = [0, 96], sizes = [1, 32], strides = [1, 1]} : vector<1x128xf32> to vector<1x32xf32>
    %46 = arith.mulf %43, %31 : vector<1x32xf32>
    %47 = arith.mulf %42, %44 : vector<1x32xf32>
    %48 = arith.addf %46, %47 : vector<1x32xf32>
    %49 = math.tanh %48 : vector<1x32xf32>
    %50 = arith.mulf %45, %49 : vector<1x32xf32>
    %51 = vector.extract_strided_slice %28 {offsets = [1, 0], sizes = [1, 128], strides = [1, 1]} : vector<16x128xf32> to vector<1x128xf32>
    %52 = arith.truncf %50 : vector<1x32xf32> to vector<1x32xbf16>
    %cst_29 = arith.constant dense<0.000000e+00> : vector<1x128xf32>
    %53 = tpu.matmul %52, %29, %cst_29 {dimension_numbers = #tpu.dot_dimension_numbers<[1], [0], [0], [1], [0, 0, 1, 1], [], []>} : vector<1x32xbf16>, vector<32x128xbf16>, vector<1x128xf32> -> vector<1x128xf32>
    %54 = arith.addf %51, %53 : vector<1x128xf32>
    %55 = arith.negf %54 : vector<1x128xf32>
    %56 = math.exp %55 : vector<1x128xf32>
    %cst_30 = arith.constant 1.000000e+00 : f32
    %57 = vector.broadcast %cst_30 : f32 to vector<1x128xf32>
    %58 = arith.addf %57, %56 : vector<1x128xf32>
    %59 = arith.divf %57, %58 : vector<1x128xf32>
    %60 = math.tanh %54 : vector<1x128xf32>
    %61 = vector.extract_strided_slice %59 {offsets = [0, 0], sizes = [1, 32], strides = [1, 1]} : vector<1x128xf32> to vector<1x32xf32>
    %62 = vector.extract_strided_slice %59 {offsets = [0, 32], sizes = [1, 32], strides = [1, 1]} : vector<1x128xf32> to vector<1x32xf32>
    %63 = vector.extract_strided_slice %60 {offsets = [0, 64], sizes = [1, 32], strides = [1, 1]} : vector<1x128xf32> to vector<1x32xf32>
    %64 = vector.extract_strided_slice %59 {offsets = [0, 96], sizes = [1, 32], strides = [1, 1]} : vector<1x128xf32> to vector<1x32xf32>
    %65 = arith.mulf %62, %48 : vector<1x32xf32>
    %66 = arith.mulf %61, %63 : vector<1x32xf32>
    %67 = arith.addf %65, %66 : vector<1x32xf32>
    %68 = math.tanh %67 : vector<1x32xf32>
    %69 = arith.mulf %64, %68 : vector<1x32xf32>
    %70 = vector.extract_strided_slice %28 {offsets = [2, 0], sizes = [1, 128], strides = [1, 1]} : vector<16x128xf32> to vector<1x128xf32>
    %71 = arith.truncf %69 : vector<1x32xf32> to vector<1x32xbf16>
    %cst_31 = arith.constant dense<0.000000e+00> : vector<1x128xf32>
    %72 = tpu.matmul %71, %29, %cst_31 {dimension_numbers = #tpu.dot_dimension_numbers<[1], [0], [0], [1], [0, 0, 1, 1], [], []>} : vector<1x32xbf16>, vector<32x128xbf16>, vector<1x128xf32> -> vector<1x128xf32>
    %73 = arith.addf %70, %72 : vector<1x128xf32>
    %74 = arith.negf %73 : vector<1x128xf32>
    %75 = math.exp %74 : vector<1x128xf32>
    %cst_32 = arith.constant 1.000000e+00 : f32
    %76 = vector.broadcast %cst_32 : f32 to vector<1x128xf32>
    %77 = arith.addf %76, %75 : vector<1x128xf32>
    %78 = arith.divf %76, %77 : vector<1x128xf32>
    %79 = math.tanh %73 : vector<1x128xf32>
    %80 = vector.extract_strided_slice %78 {offsets = [0, 0], sizes = [1, 32], strides = [1, 1]} : vector<1x128xf32> to vector<1x32xf32>
    %81 = vector.extract_strided_slice %78 {offsets = [0, 32], sizes = [1, 32], strides = [1, 1]} : vector<1x128xf32> to vector<1x32xf32>
    %82 = vector.extract_strided_slice %79 {offsets = [0, 64], sizes = [1, 32], strides = [1, 1]} : vector<1x128xf32> to vector<1x32xf32>
    %83 = vector.extract_strided_slice %78 {offsets = [0, 96], sizes = [1, 32], strides = [1, 1]} : vector<1x128xf32> to vector<1x32xf32>
    %84 = arith.mulf %81, %67 : vector<1x32xf32>
    %85 = arith.mulf %80, %82 : vector<1x32xf32>
    %86 = arith.addf %84, %85 : vector<1x32xf32>
    %87 = math.tanh %86 : vector<1x32xf32>
    %88 = arith.mulf %83, %87 : vector<1x32xf32>
    %89 = vector.extract_strided_slice %28 {offsets = [3, 0], sizes = [1, 128], strides = [1, 1]} : vector<16x128xf32> to vector<1x128xf32>
    %90 = arith.truncf %88 : vector<1x32xf32> to vector<1x32xbf16>
    %cst_33 = arith.constant dense<0.000000e+00> : vector<1x128xf32>
    %91 = tpu.matmul %90, %29, %cst_33 {dimension_numbers = #tpu.dot_dimension_numbers<[1], [0], [0], [1], [0, 0, 1, 1], [], []>} : vector<1x32xbf16>, vector<32x128xbf16>, vector<1x128xf32> -> vector<1x128xf32>
    %92 = arith.addf %89, %91 : vector<1x128xf32>
    %93 = arith.negf %92 : vector<1x128xf32>
    %94 = math.exp %93 : vector<1x128xf32>
    %cst_34 = arith.constant 1.000000e+00 : f32
    %95 = vector.broadcast %cst_34 : f32 to vector<1x128xf32>
    %96 = arith.addf %95, %94 : vector<1x128xf32>
    %97 = arith.divf %95, %96 : vector<1x128xf32>
    %98 = math.tanh %92 : vector<1x128xf32>
    %99 = vector.extract_strided_slice %97 {offsets = [0, 0], sizes = [1, 32], strides = [1, 1]} : vector<1x128xf32> to vector<1x32xf32>
    %100 = vector.extract_strided_slice %97 {offsets = [0, 32], sizes = [1, 32], strides = [1, 1]} : vector<1x128xf32> to vector<1x32xf32>
    %101 = vector.extract_strided_slice %98 {offsets = [0, 64], sizes = [1, 32], strides = [1, 1]} : vector<1x128xf32> to vector<1x32xf32>
    %102 = vector.extract_strided_slice %97 {offsets = [0, 96], sizes = [1, 32], strides = [1, 1]} : vector<1x128xf32> to vector<1x32xf32>
    %103 = arith.mulf %100, %86 : vector<1x32xf32>
    %104 = arith.mulf %99, %101 : vector<1x32xf32>
    %105 = arith.addf %103, %104 : vector<1x32xf32>
    %106 = math.tanh %105 : vector<1x32xf32>
    %107 = arith.mulf %102, %106 : vector<1x32xf32>
    %108 = vector.extract_strided_slice %28 {offsets = [4, 0], sizes = [1, 128], strides = [1, 1]} : vector<16x128xf32> to vector<1x128xf32>
    %109 = arith.truncf %107 : vector<1x32xf32> to vector<1x32xbf16>
    %cst_35 = arith.constant dense<0.000000e+00> : vector<1x128xf32>
    %110 = tpu.matmul %109, %29, %cst_35 {dimension_numbers = #tpu.dot_dimension_numbers<[1], [0], [0], [1], [0, 0, 1, 1], [], []>} : vector<1x32xbf16>, vector<32x128xbf16>, vector<1x128xf32> -> vector<1x128xf32>
    %111 = arith.addf %108, %110 : vector<1x128xf32>
    %112 = arith.negf %111 : vector<1x128xf32>
    %113 = math.exp %112 : vector<1x128xf32>
    %cst_36 = arith.constant 1.000000e+00 : f32
    %114 = vector.broadcast %cst_36 : f32 to vector<1x128xf32>
    %115 = arith.addf %114, %113 : vector<1x128xf32>
    %116 = arith.divf %114, %115 : vector<1x128xf32>
    %117 = math.tanh %111 : vector<1x128xf32>
    %118 = vector.extract_strided_slice %116 {offsets = [0, 0], sizes = [1, 32], strides = [1, 1]} : vector<1x128xf32> to vector<1x32xf32>
    %119 = vector.extract_strided_slice %116 {offsets = [0, 32], sizes = [1, 32], strides = [1, 1]} : vector<1x128xf32> to vector<1x32xf32>
    %120 = vector.extract_strided_slice %117 {offsets = [0, 64], sizes = [1, 32], strides = [1, 1]} : vector<1x128xf32> to vector<1x32xf32>
    %121 = vector.extract_strided_slice %116 {offsets = [0, 96], sizes = [1, 32], strides = [1, 1]} : vector<1x128xf32> to vector<1x32xf32>
    %122 = arith.mulf %119, %105 : vector<1x32xf32>
    %123 = arith.mulf %118, %120 : vector<1x32xf32>
    %124 = arith.addf %122, %123 : vector<1x32xf32>
    %125 = math.tanh %124 : vector<1x32xf32>
    %126 = arith.mulf %121, %125 : vector<1x32xf32>
    %127 = vector.extract_strided_slice %28 {offsets = [5, 0], sizes = [1, 128], strides = [1, 1]} : vector<16x128xf32> to vector<1x128xf32>
    %128 = arith.truncf %126 : vector<1x32xf32> to vector<1x32xbf16>
    %cst_37 = arith.constant dense<0.000000e+00> : vector<1x128xf32>
    %129 = tpu.matmul %128, %29, %cst_37 {dimension_numbers = #tpu.dot_dimension_numbers<[1], [0], [0], [1], [0, 0, 1, 1], [], []>} : vector<1x32xbf16>, vector<32x128xbf16>, vector<1x128xf32> -> vector<1x128xf32>
    %130 = arith.addf %127, %129 : vector<1x128xf32>
    %131 = arith.negf %130 : vector<1x128xf32>
    %132 = math.exp %131 : vector<1x128xf32>
    %cst_38 = arith.constant 1.000000e+00 : f32
    %133 = vector.broadcast %cst_38 : f32 to vector<1x128xf32>
    %134 = arith.addf %133, %132 : vector<1x128xf32>
    %135 = arith.divf %133, %134 : vector<1x128xf32>
    %136 = math.tanh %130 : vector<1x128xf32>
    %137 = vector.extract_strided_slice %135 {offsets = [0, 0], sizes = [1, 32], strides = [1, 1]} : vector<1x128xf32> to vector<1x32xf32>
    %138 = vector.extract_strided_slice %135 {offsets = [0, 32], sizes = [1, 32], strides = [1, 1]} : vector<1x128xf32> to vector<1x32xf32>
    %139 = vector.extract_strided_slice %136 {offsets = [0, 64], sizes = [1, 32], strides = [1, 1]} : vector<1x128xf32> to vector<1x32xf32>
    %140 = vector.extract_strided_slice %135 {offsets = [0, 96], sizes = [1, 32], strides = [1, 1]} : vector<1x128xf32> to vector<1x32xf32>
    %141 = arith.mulf %138, %124 : vector<1x32xf32>
    %142 = arith.mulf %137, %139 : vector<1x32xf32>
    %143 = arith.addf %141, %142 : vector<1x32xf32>
    %144 = math.tanh %143 : vector<1x32xf32>
    %145 = arith.mulf %140, %144 : vector<1x32xf32>
    %146 = vector.extract_strided_slice %28 {offsets = [6, 0], sizes = [1, 128], strides = [1, 1]} : vector<16x128xf32> to vector<1x128xf32>
    %147 = arith.truncf %145 : vector<1x32xf32> to vector<1x32xbf16>
    %cst_39 = arith.constant dense<0.000000e+00> : vector<1x128xf32>
    %148 = tpu.matmul %147, %29, %cst_39 {dimension_numbers = #tpu.dot_dimension_numbers<[1], [0], [0], [1], [0, 0, 1, 1], [], []>} : vector<1x32xbf16>, vector<32x128xbf16>, vector<1x128xf32> -> vector<1x128xf32>
    %149 = arith.addf %146, %148 : vector<1x128xf32>
    %150 = arith.negf %149 : vector<1x128xf32>
    %151 = math.exp %150 : vector<1x128xf32>
    %cst_40 = arith.constant 1.000000e+00 : f32
    %152 = vector.broadcast %cst_40 : f32 to vector<1x128xf32>
    %153 = arith.addf %152, %151 : vector<1x128xf32>
    %154 = arith.divf %152, %153 : vector<1x128xf32>
    %155 = math.tanh %149 : vector<1x128xf32>
    %156 = vector.extract_strided_slice %154 {offsets = [0, 0], sizes = [1, 32], strides = [1, 1]} : vector<1x128xf32> to vector<1x32xf32>
    %157 = vector.extract_strided_slice %154 {offsets = [0, 32], sizes = [1, 32], strides = [1, 1]} : vector<1x128xf32> to vector<1x32xf32>
    %158 = vector.extract_strided_slice %155 {offsets = [0, 64], sizes = [1, 32], strides = [1, 1]} : vector<1x128xf32> to vector<1x32xf32>
    %159 = vector.extract_strided_slice %154 {offsets = [0, 96], sizes = [1, 32], strides = [1, 1]} : vector<1x128xf32> to vector<1x32xf32>
    %160 = arith.mulf %157, %143 : vector<1x32xf32>
    %161 = arith.mulf %156, %158 : vector<1x32xf32>
    %162 = arith.addf %160, %161 : vector<1x32xf32>
    %163 = math.tanh %162 : vector<1x32xf32>
    %164 = arith.mulf %159, %163 : vector<1x32xf32>
    %165 = vector.extract_strided_slice %28 {offsets = [7, 0], sizes = [1, 128], strides = [1, 1]} : vector<16x128xf32> to vector<1x128xf32>
    %166 = arith.truncf %164 : vector<1x32xf32> to vector<1x32xbf16>
    %cst_41 = arith.constant dense<0.000000e+00> : vector<1x128xf32>
    %167 = tpu.matmul %166, %29, %cst_41 {dimension_numbers = #tpu.dot_dimension_numbers<[1], [0], [0], [1], [0, 0, 1, 1], [], []>} : vector<1x32xbf16>, vector<32x128xbf16>, vector<1x128xf32> -> vector<1x128xf32>
    %168 = arith.addf %165, %167 : vector<1x128xf32>
    %169 = arith.negf %168 : vector<1x128xf32>
    %170 = math.exp %169 : vector<1x128xf32>
    %cst_42 = arith.constant 1.000000e+00 : f32
    %171 = vector.broadcast %cst_42 : f32 to vector<1x128xf32>
    %172 = arith.addf %171, %170 : vector<1x128xf32>
    %173 = arith.divf %171, %172 : vector<1x128xf32>
    %174 = math.tanh %168 : vector<1x128xf32>
    %175 = vector.extract_strided_slice %173 {offsets = [0, 0], sizes = [1, 32], strides = [1, 1]} : vector<1x128xf32> to vector<1x32xf32>
    %176 = vector.extract_strided_slice %173 {offsets = [0, 32], sizes = [1, 32], strides = [1, 1]} : vector<1x128xf32> to vector<1x32xf32>
    %177 = vector.extract_strided_slice %174 {offsets = [0, 64], sizes = [1, 32], strides = [1, 1]} : vector<1x128xf32> to vector<1x32xf32>
    %178 = vector.extract_strided_slice %173 {offsets = [0, 96], sizes = [1, 32], strides = [1, 1]} : vector<1x128xf32> to vector<1x32xf32>
    %179 = arith.mulf %176, %162 : vector<1x32xf32>
    %180 = arith.mulf %175, %177 : vector<1x32xf32>
    %181 = arith.addf %179, %180 : vector<1x32xf32>
    %182 = math.tanh %181 : vector<1x32xf32>
    %183 = arith.mulf %178, %182 : vector<1x32xf32>
    %184 = vector.extract_strided_slice %28 {offsets = [8, 0], sizes = [1, 128], strides = [1, 1]} : vector<16x128xf32> to vector<1x128xf32>
    %185 = arith.truncf %183 : vector<1x32xf32> to vector<1x32xbf16>
    %cst_43 = arith.constant dense<0.000000e+00> : vector<1x128xf32>
    %186 = tpu.matmul %185, %29, %cst_43 {dimension_numbers = #tpu.dot_dimension_numbers<[1], [0], [0], [1], [0, 0, 1, 1], [], []>} : vector<1x32xbf16>, vector<32x128xbf16>, vector<1x128xf32> -> vector<1x128xf32>
    %187 = arith.addf %184, %186 : vector<1x128xf32>
    %188 = arith.negf %187 : vector<1x128xf32>
    %189 = math.exp %188 : vector<1x128xf32>
    %cst_44 = arith.constant 1.000000e+00 : f32
    %190 = vector.broadcast %cst_44 : f32 to vector<1x128xf32>
    %191 = arith.addf %190, %189 : vector<1x128xf32>
    %192 = arith.divf %190, %191 : vector<1x128xf32>
    %193 = math.tanh %187 : vector<1x128xf32>
    %194 = vector.extract_strided_slice %192 {offsets = [0, 0], sizes = [1, 32], strides = [1, 1]} : vector<1x128xf32> to vector<1x32xf32>
    %195 = vector.extract_strided_slice %192 {offsets = [0, 32], sizes = [1, 32], strides = [1, 1]} : vector<1x128xf32> to vector<1x32xf32>
    %196 = vector.extract_strided_slice %193 {offsets = [0, 64], sizes = [1, 32], strides = [1, 1]} : vector<1x128xf32> to vector<1x32xf32>
    %197 = vector.extract_strided_slice %192 {offsets = [0, 96], sizes = [1, 32], strides = [1, 1]} : vector<1x128xf32> to vector<1x32xf32>
    %198 = arith.mulf %195, %181 : vector<1x32xf32>
    %199 = arith.mulf %194, %196 : vector<1x32xf32>
    %200 = arith.addf %198, %199 : vector<1x32xf32>
    %201 = math.tanh %200 : vector<1x32xf32>
    %202 = arith.mulf %197, %201 : vector<1x32xf32>
    %203 = vector.extract_strided_slice %28 {offsets = [9, 0], sizes = [1, 128], strides = [1, 1]} : vector<16x128xf32> to vector<1x128xf32>
    %204 = arith.truncf %202 : vector<1x32xf32> to vector<1x32xbf16>
    %cst_45 = arith.constant dense<0.000000e+00> : vector<1x128xf32>
    %205 = tpu.matmul %204, %29, %cst_45 {dimension_numbers = #tpu.dot_dimension_numbers<[1], [0], [0], [1], [0, 0, 1, 1], [], []>} : vector<1x32xbf16>, vector<32x128xbf16>, vector<1x128xf32> -> vector<1x128xf32>
    %206 = arith.addf %203, %205 : vector<1x128xf32>
    %207 = arith.negf %206 : vector<1x128xf32>
    %208 = math.exp %207 : vector<1x128xf32>
    %cst_46 = arith.constant 1.000000e+00 : f32
    %209 = vector.broadcast %cst_46 : f32 to vector<1x128xf32>
    %210 = arith.addf %209, %208 : vector<1x128xf32>
    %211 = arith.divf %209, %210 : vector<1x128xf32>
    %212 = math.tanh %206 : vector<1x128xf32>
    %213 = vector.extract_strided_slice %211 {offsets = [0, 0], sizes = [1, 32], strides = [1, 1]} : vector<1x128xf32> to vector<1x32xf32>
    %214 = vector.extract_strided_slice %211 {offsets = [0, 32], sizes = [1, 32], strides = [1, 1]} : vector<1x128xf32> to vector<1x32xf32>
    %215 = vector.extract_strided_slice %212 {offsets = [0, 64], sizes = [1, 32], strides = [1, 1]} : vector<1x128xf32> to vector<1x32xf32>
    %216 = vector.extract_strided_slice %211 {offsets = [0, 96], sizes = [1, 32], strides = [1, 1]} : vector<1x128xf32> to vector<1x32xf32>
    %217 = arith.mulf %214, %200 : vector<1x32xf32>
    %218 = arith.mulf %213, %215 : vector<1x32xf32>
    %219 = arith.addf %217, %218 : vector<1x32xf32>
    %220 = math.tanh %219 : vector<1x32xf32>
    %221 = arith.mulf %216, %220 : vector<1x32xf32>
    %222 = vector.extract_strided_slice %28 {offsets = [10, 0], sizes = [1, 128], strides = [1, 1]} : vector<16x128xf32> to vector<1x128xf32>
    %223 = arith.truncf %221 : vector<1x32xf32> to vector<1x32xbf16>
    %cst_47 = arith.constant dense<0.000000e+00> : vector<1x128xf32>
    %224 = tpu.matmul %223, %29, %cst_47 {dimension_numbers = #tpu.dot_dimension_numbers<[1], [0], [0], [1], [0, 0, 1, 1], [], []>} : vector<1x32xbf16>, vector<32x128xbf16>, vector<1x128xf32> -> vector<1x128xf32>
    %225 = arith.addf %222, %224 : vector<1x128xf32>
    %226 = arith.negf %225 : vector<1x128xf32>
    %227 = math.exp %226 : vector<1x128xf32>
    %cst_48 = arith.constant 1.000000e+00 : f32
    %228 = vector.broadcast %cst_48 : f32 to vector<1x128xf32>
    %229 = arith.addf %228, %227 : vector<1x128xf32>
    %230 = arith.divf %228, %229 : vector<1x128xf32>
    %231 = math.tanh %225 : vector<1x128xf32>
    %232 = vector.extract_strided_slice %230 {offsets = [0, 0], sizes = [1, 32], strides = [1, 1]} : vector<1x128xf32> to vector<1x32xf32>
    %233 = vector.extract_strided_slice %230 {offsets = [0, 32], sizes = [1, 32], strides = [1, 1]} : vector<1x128xf32> to vector<1x32xf32>
    %234 = vector.extract_strided_slice %231 {offsets = [0, 64], sizes = [1, 32], strides = [1, 1]} : vector<1x128xf32> to vector<1x32xf32>
    %235 = vector.extract_strided_slice %230 {offsets = [0, 96], sizes = [1, 32], strides = [1, 1]} : vector<1x128xf32> to vector<1x32xf32>
    %236 = arith.mulf %233, %219 : vector<1x32xf32>
    %237 = arith.mulf %232, %234 : vector<1x32xf32>
    %238 = arith.addf %236, %237 : vector<1x32xf32>
    %239 = math.tanh %238 : vector<1x32xf32>
    %240 = arith.mulf %235, %239 : vector<1x32xf32>
    %241 = vector.extract_strided_slice %28 {offsets = [11, 0], sizes = [1, 128], strides = [1, 1]} : vector<16x128xf32> to vector<1x128xf32>
    %242 = arith.truncf %240 : vector<1x32xf32> to vector<1x32xbf16>
    %cst_49 = arith.constant dense<0.000000e+00> : vector<1x128xf32>
    %243 = tpu.matmul %242, %29, %cst_49 {dimension_numbers = #tpu.dot_dimension_numbers<[1], [0], [0], [1], [0, 0, 1, 1], [], []>} : vector<1x32xbf16>, vector<32x128xbf16>, vector<1x128xf32> -> vector<1x128xf32>
    %244 = arith.addf %241, %243 : vector<1x128xf32>
    %245 = arith.negf %244 : vector<1x128xf32>
    %246 = math.exp %245 : vector<1x128xf32>
    %cst_50 = arith.constant 1.000000e+00 : f32
    %247 = vector.broadcast %cst_50 : f32 to vector<1x128xf32>
    %248 = arith.addf %247, %246 : vector<1x128xf32>
    %249 = arith.divf %247, %248 : vector<1x128xf32>
    %250 = math.tanh %244 : vector<1x128xf32>
    %251 = vector.extract_strided_slice %249 {offsets = [0, 0], sizes = [1, 32], strides = [1, 1]} : vector<1x128xf32> to vector<1x32xf32>
    %252 = vector.extract_strided_slice %249 {offsets = [0, 32], sizes = [1, 32], strides = [1, 1]} : vector<1x128xf32> to vector<1x32xf32>
    %253 = vector.extract_strided_slice %250 {offsets = [0, 64], sizes = [1, 32], strides = [1, 1]} : vector<1x128xf32> to vector<1x32xf32>
    %254 = vector.extract_strided_slice %249 {offsets = [0, 96], sizes = [1, 32], strides = [1, 1]} : vector<1x128xf32> to vector<1x32xf32>
    %255 = arith.mulf %252, %238 : vector<1x32xf32>
    %256 = arith.mulf %251, %253 : vector<1x32xf32>
    %257 = arith.addf %255, %256 : vector<1x32xf32>
    %258 = math.tanh %257 : vector<1x32xf32>
    %259 = arith.mulf %254, %258 : vector<1x32xf32>
    %260 = vector.extract_strided_slice %28 {offsets = [12, 0], sizes = [1, 128], strides = [1, 1]} : vector<16x128xf32> to vector<1x128xf32>
    %261 = arith.truncf %259 : vector<1x32xf32> to vector<1x32xbf16>
    %cst_51 = arith.constant dense<0.000000e+00> : vector<1x128xf32>
    %262 = tpu.matmul %261, %29, %cst_51 {dimension_numbers = #tpu.dot_dimension_numbers<[1], [0], [0], [1], [0, 0, 1, 1], [], []>} : vector<1x32xbf16>, vector<32x128xbf16>, vector<1x128xf32> -> vector<1x128xf32>
    %263 = arith.addf %260, %262 : vector<1x128xf32>
    %264 = arith.negf %263 : vector<1x128xf32>
    %265 = math.exp %264 : vector<1x128xf32>
    %cst_52 = arith.constant 1.000000e+00 : f32
    %266 = vector.broadcast %cst_52 : f32 to vector<1x128xf32>
    %267 = arith.addf %266, %265 : vector<1x128xf32>
    %268 = arith.divf %266, %267 : vector<1x128xf32>
    %269 = math.tanh %263 : vector<1x128xf32>
    %270 = vector.extract_strided_slice %268 {offsets = [0, 0], sizes = [1, 32], strides = [1, 1]} : vector<1x128xf32> to vector<1x32xf32>
    %271 = vector.extract_strided_slice %268 {offsets = [0, 32], sizes = [1, 32], strides = [1, 1]} : vector<1x128xf32> to vector<1x32xf32>
    %272 = vector.extract_strided_slice %269 {offsets = [0, 64], sizes = [1, 32], strides = [1, 1]} : vector<1x128xf32> to vector<1x32xf32>
    %273 = vector.extract_strided_slice %268 {offsets = [0, 96], sizes = [1, 32], strides = [1, 1]} : vector<1x128xf32> to vector<1x32xf32>
    %274 = arith.mulf %271, %257 : vector<1x32xf32>
    %275 = arith.mulf %270, %272 : vector<1x32xf32>
    %276 = arith.addf %274, %275 : vector<1x32xf32>
    %277 = math.tanh %276 : vector<1x32xf32>
    %278 = arith.mulf %273, %277 : vector<1x32xf32>
    %279 = vector.extract_strided_slice %28 {offsets = [13, 0], sizes = [1, 128], strides = [1, 1]} : vector<16x128xf32> to vector<1x128xf32>
    %280 = arith.truncf %278 : vector<1x32xf32> to vector<1x32xbf16>
    %cst_53 = arith.constant dense<0.000000e+00> : vector<1x128xf32>
    %281 = tpu.matmul %280, %29, %cst_53 {dimension_numbers = #tpu.dot_dimension_numbers<[1], [0], [0], [1], [0, 0, 1, 1], [], []>} : vector<1x32xbf16>, vector<32x128xbf16>, vector<1x128xf32> -> vector<1x128xf32>
    %282 = arith.addf %279, %281 : vector<1x128xf32>
    %283 = arith.negf %282 : vector<1x128xf32>
    %284 = math.exp %283 : vector<1x128xf32>
    %cst_54 = arith.constant 1.000000e+00 : f32
    %285 = vector.broadcast %cst_54 : f32 to vector<1x128xf32>
    %286 = arith.addf %285, %284 : vector<1x128xf32>
    %287 = arith.divf %285, %286 : vector<1x128xf32>
    %288 = math.tanh %282 : vector<1x128xf32>
    %289 = vector.extract_strided_slice %287 {offsets = [0, 0], sizes = [1, 32], strides = [1, 1]} : vector<1x128xf32> to vector<1x32xf32>
    %290 = vector.extract_strided_slice %287 {offsets = [0, 32], sizes = [1, 32], strides = [1, 1]} : vector<1x128xf32> to vector<1x32xf32>
    %291 = vector.extract_strided_slice %288 {offsets = [0, 64], sizes = [1, 32], strides = [1, 1]} : vector<1x128xf32> to vector<1x32xf32>
    %292 = vector.extract_strided_slice %287 {offsets = [0, 96], sizes = [1, 32], strides = [1, 1]} : vector<1x128xf32> to vector<1x32xf32>
    %293 = arith.mulf %290, %276 : vector<1x32xf32>
    %294 = arith.mulf %289, %291 : vector<1x32xf32>
    %295 = arith.addf %293, %294 : vector<1x32xf32>
    %296 = math.tanh %295 : vector<1x32xf32>
    %297 = arith.mulf %292, %296 : vector<1x32xf32>
    %298 = vector.extract_strided_slice %28 {offsets = [14, 0], sizes = [1, 128], strides = [1, 1]} : vector<16x128xf32> to vector<1x128xf32>
    %299 = arith.truncf %297 : vector<1x32xf32> to vector<1x32xbf16>
    %cst_55 = arith.constant dense<0.000000e+00> : vector<1x128xf32>
    %300 = tpu.matmul %299, %29, %cst_55 {dimension_numbers = #tpu.dot_dimension_numbers<[1], [0], [0], [1], [0, 0, 1, 1], [], []>} : vector<1x32xbf16>, vector<32x128xbf16>, vector<1x128xf32> -> vector<1x128xf32>
    %301 = arith.addf %298, %300 : vector<1x128xf32>
    %302 = arith.negf %301 : vector<1x128xf32>
    %303 = math.exp %302 : vector<1x128xf32>
    %cst_56 = arith.constant 1.000000e+00 : f32
    %304 = vector.broadcast %cst_56 : f32 to vector<1x128xf32>
    %305 = arith.addf %304, %303 : vector<1x128xf32>
    %306 = arith.divf %304, %305 : vector<1x128xf32>
    %307 = math.tanh %301 : vector<1x128xf32>
    %308 = vector.extract_strided_slice %306 {offsets = [0, 0], sizes = [1, 32], strides = [1, 1]} : vector<1x128xf32> to vector<1x32xf32>
    %309 = vector.extract_strided_slice %306 {offsets = [0, 32], sizes = [1, 32], strides = [1, 1]} : vector<1x128xf32> to vector<1x32xf32>
    %310 = vector.extract_strided_slice %307 {offsets = [0, 64], sizes = [1, 32], strides = [1, 1]} : vector<1x128xf32> to vector<1x32xf32>
    %311 = vector.extract_strided_slice %306 {offsets = [0, 96], sizes = [1, 32], strides = [1, 1]} : vector<1x128xf32> to vector<1x32xf32>
    %312 = arith.mulf %309, %295 : vector<1x32xf32>
    %313 = arith.mulf %308, %310 : vector<1x32xf32>
    %314 = arith.addf %312, %313 : vector<1x32xf32>
    %315 = math.tanh %314 : vector<1x32xf32>
    %316 = arith.mulf %311, %315 : vector<1x32xf32>
    %317 = vector.extract_strided_slice %28 {offsets = [15, 0], sizes = [1, 128], strides = [1, 1]} : vector<16x128xf32> to vector<1x128xf32>
    %318 = arith.truncf %316 : vector<1x32xf32> to vector<1x32xbf16>
    %cst_57 = arith.constant dense<0.000000e+00> : vector<1x128xf32>
    %319 = tpu.matmul %318, %29, %cst_57 {dimension_numbers = #tpu.dot_dimension_numbers<[1], [0], [0], [1], [0, 0, 1, 1], [], []>} : vector<1x32xbf16>, vector<32x128xbf16>, vector<1x128xf32> -> vector<1x128xf32>
    %320 = arith.addf %317, %319 : vector<1x128xf32>
    %321 = arith.negf %320 : vector<1x128xf32>
    %322 = math.exp %321 : vector<1x128xf32>
    %cst_58 = arith.constant 1.000000e+00 : f32
    %323 = vector.broadcast %cst_58 : f32 to vector<1x128xf32>
    %324 = arith.addf %323, %322 : vector<1x128xf32>
    %325 = arith.divf %323, %324 : vector<1x128xf32>
    %326 = math.tanh %320 : vector<1x128xf32>
    %327 = vector.extract_strided_slice %325 {offsets = [0, 0], sizes = [1, 32], strides = [1, 1]} : vector<1x128xf32> to vector<1x32xf32>
    %328 = vector.extract_strided_slice %325 {offsets = [0, 32], sizes = [1, 32], strides = [1, 1]} : vector<1x128xf32> to vector<1x32xf32>
    %329 = vector.extract_strided_slice %326 {offsets = [0, 64], sizes = [1, 32], strides = [1, 1]} : vector<1x128xf32> to vector<1x32xf32>
    %330 = vector.extract_strided_slice %325 {offsets = [0, 96], sizes = [1, 32], strides = [1, 1]} : vector<1x128xf32> to vector<1x32xf32>
    %331 = arith.mulf %328, %314 : vector<1x32xf32>
    %332 = arith.mulf %327, %329 : vector<1x32xf32>
    %333 = arith.addf %331, %332 : vector<1x32xf32>
    %334 = math.tanh %333 : vector<1x32xf32>
    %335 = arith.mulf %330, %334 : vector<1x32xf32>
    %336 = tpu.concatenate %50, %69, %88, %107, %126, %145, %164, %183, %202, %221, %240, %259, %278, %297, %316, %335 in 0 : vector<1x32xf32>, vector<1x32xf32>, vector<1x32xf32>, vector<1x32xf32>, vector<1x32xf32>, vector<1x32xf32>, vector<1x32xf32>, vector<1x32xf32>, vector<1x32xf32>, vector<1x32xf32>, vector<1x32xf32>, vector<1x32xf32>, vector<1x32xf32>, vector<1x32xf32>, vector<1x32xf32>, vector<1x32xf32> -> vector<16x32xf32>
    %c0_59 = arith.constant 0 : index
    %c0_60 = arith.constant 0 : index
    %337 = vector.load %arg10[%c0_59, %c0_60] : memref<32x128xf32, #tpu.memory_space<vmem>>, vector<32x128xf32>
    %cst_61 = arith.constant dense<0.000000e+00> : vector<16x128xf32>
    %338 = tpu.matmul %336, %337, %cst_61 {dimension_numbers = #tpu.dot_dimension_numbers<[1], [0], [0], [1], [0, 0, 1, 1], [], []>} : vector<16x32xf32>, vector<32x128xf32>, vector<16x128xf32> -> vector<16x128xf32>
    %c0_62 = arith.constant 0 : index
    %c0_63 = arith.constant 0 : index
    %339 = vector.load %arg11[%c0_62, %c0_63] : memref<1x128xf32, #tpu.memory_space<vmem>>, vector<1x128xf32>
    %340 = vector.broadcast %339 : vector<1x128xf32> to vector<16x128xf32>
    %341 = arith.addf %338, %340 : vector<16x128xf32>
    %c0_64 = arith.constant 0 : index
    %c0_65 = arith.constant 0 : index
    %342 = vector.load %arg12[%c0_64, %c0_65] : memref<16x128xf32, #tpu.memory_space<vmem>>, vector<16x128xf32>
    tpu.vector_store %arg12[%c0_64, %c0_65], %341 {strides = array<i32>} : memref<16x128xf32, #tpu.memory_space<vmem>>, vector<16x128xf32>,
    return
  }
}

</mosaic_0001>

<bundles_post_ra>
// kernel: tpu_custom_call.1
= control target key start
LH: loop header
LB: loop body
LE: loop exit
PB: predicated region body
PF: predicated region fallthrough
CT: control target
= control target key end

     0   :  { %17 = vsyncpa [#allocation3], 0  ;;  %s2180_s0 = inlined_call_operand.vmem [shape: bf16[16,4], index: 0, kind: input, shape index: {}]   ;;  %s2181_s1 = inlined_call_operand.hbm [shape: bf16[16,16], index: 1, kind: input, shape index: {}]   ;;  %s2182_s2 = inlined_call_operand.hbm [shape: bf16[4,32], index: 2, kind: input, shape index: {}]   ;;  %s2183_s3 = inlined_call_operand.hbm [shape: f32[1,32], index: 3, kind: input, shape index: {}]   ;;  %s2184_s4 = inlined_call_operand.hbm [shape: bf16[32,32], index: 4, kind: input, shape index: {}]   ;;  %s2185_s5 = inlined_call_operand.hbm [shape: f32[1,32], index: 5, kind: input, shape index: {}]   ;;  %s2186_s6 = inlined_call_operand.hbm [shape: bf16[32,128], index: 6, kind: input, shape index: {}]   ;;  %s2187_s7 = inlined_call_operand.vmem [shape: bf16[32,128], index: 7, kind: input, shape index: {}]   ;;  %s2188_s8 = inlined_call_operand.vmem [shape: f32[1,128], index: 8, kind: input, shape index: {}]   ;;  %s2189_s9 = inlined_call_operand.vmem [shape: f32[1,128], index: 9, kind: input, shape index: {}]   ;;  %s2190_s10 = inlined_call_operand.hbm [shape: f32[32,128], index: 10, kind: input, shape index: {}]   ;;  %s2191_s11 = inlined_call_operand.vmem [shape: f32[1,128], index: 11, kind: input, shape index: {}]   ;;  %s2192_s12 = inlined_call_operand.hbm [shape: f32[16,128], index: 12, kind: output, shape index: {}]  }
   0x1   :  { %18 = vsyncpa [#allocation6], 0 }
   0x2   :  { %19 = vsyncpa [#allocation9], 0 }
   0x3   :  { %20 = vsyncpa [#allocation12], 0  ;;  %s42_s23 = sshll.u32 %s2182_s2, 4  ;;  %s43_s23 = int_to_ptr.hbm [resolvable:$true] %s42_s23 }
   0x4   :  { %21 = vsyncpa [#allocation4], 0  ;;  %s1867_s24 = smov [#allocation5]   ;;  %s63_s28 = sshll.u32 %s2184_s4, 4  ;;  %s64_s28 = int_to_ptr.hbm [resolvable:$true] %s63_s28 }
   0x5   :  { %s44_s25 = sshll.u32 %s1867_s24, 4  ;;  %s1868_s29 = smov [#allocation8]   ;;  %s45_s25 = int_to_ptr.vmem [resolvable:$true] %s44_s25 }
   0x6   :  { %47 = dma.hbm_to_vmem [thread:$0]  %s43_s23, 32, %s45_s25, [#allocation6]  }
   0x7   :  { %s65_s30 = sshll.u32 %s1868_s29, 4  ;;  %s87_s15 = sshll.u32 %s2186_s6, 4  ;;  %s66_s30 = int_to_ptr.vmem [resolvable:$true] %s65_s30  ;;  %s88_s15 = int_to_ptr.hbm [resolvable:$true] %s87_s15 }
   0x8   :  { %s1869_s2 = smov 64   ;;  %s1870_s16 = smov 4  }
   0x9   :  { %71 = dma.hbm_to_vmem [thread:$0]  %s64_s28, 256, %s66_s30, [#allocation9], %s1869_s2, %s1869_s2, %s1870_s16  }
   0xa   :  { %s28_s19 = sshll.u32 %s2181_s1, 4  ;;  %s1871_s20 = smov [#allocation11]   ;;  %s29_s19 = int_to_ptr.hbm [resolvable:$true] %s28_s19 }
   0xb   :  { %s89_s4 = sshll.u32 %s1871_s20, 4  ;;  %s1872_s21 = smov [#allocation2]   ;;  %s90_s4 = int_to_ptr.vmem [resolvable:$true] %s89_s4 }
   0xc   :  { %95 = dma.hbm_to_vmem [thread:$0]  %s88_s15, 256, %s90_s4, [#allocation12], %s1869_s2, %s1869_s2, %s1870_s16  }
   0xd   :  { %s30_s6 = sshll.u32 %s1872_s21, 4  ;;  %s53_s24 = sshll.u32 %s2183_s3, 4  ;;  %s31_s6 = int_to_ptr.vmem [resolvable:$true] %s30_s6  ;;  %s54_s24 = int_to_ptr.hbm [resolvable:$true] %s53_s24 }
   0xe   :  { %36 = dma.hbm_to_vmem [thread:$0]  %s29_s19, 128, %s31_s6, [#allocation3], %s1869_s2, %s1869_s2, %s1870_s16  }
   0xf   :  { %s77_s26 = sshll.u32 %s2185_s5, 4  ;;  %s1873_s27 = smov [#allocation7]   ;;  %s78_s26 = int_to_ptr.hbm [resolvable:$true] %s77_s26 }
  0x10   :  { %s55_s28 = sshll.u32 %s1873_s27, 4  ;;  %s1874_s29 = smov [#allocation10]   ;;  %s56_s28 = int_to_ptr.vmem [resolvable:$true] %s55_s28 }
  0x11   :  { %58 = dma.hbm_to_vmem [thread:$0]  %s54_s24, 16, %s56_s28, [#allocation6]  }
  0x12   :  { %s79_s30 = sshll.u32 %s1874_s29, 4  ;;  %s106_s3 = sshll.u32 %s2190_s10, 4  ;;  %s80_s30 = int_to_ptr.vmem [resolvable:$true] %s79_s30  ;;  %s107_s3 = int_to_ptr.hbm [resolvable:$true] %s106_s3 }
  0x13   :  { %82 = dma.hbm_to_vmem [thread:$0]  %s78_s26, 16, %s80_s30, [#allocation9]  }
  0x14   :  { %s1875_s15 = smov [#allocation13]   ;;  %s1876_s17 = smov 128  }
  0x15   :  { %s108_s16 = sshll.u32 %s1875_s15, 4  ;;  %s1877_s18 = smov 8   ;;  %s109_s16 = int_to_ptr.vmem [resolvable:$true] %s108_s16 }
  0x16   :  { %114 = dma.hbm_to_vmem [thread:$0]  %s107_s3, 512, %s109_s16, [#allocation12], %s1876_s17, %s1876_s17, %s1877_s18  }
  0x17   :  { %1857 = dma.done.wait [#allocation3], 128  }
  0x18   :  { %1858 = vsyncadd [#allocation3], 4294967168 }
  0x19   :  { %1859 = dma.done.wait [#allocation6], 48  }
  0x1a   :  { %1860 = vsyncadd [#allocation6], 4294967248 }
  0x1b   :  { %1861 = dma.done.wait [#allocation9], 272  }
  0x1c   :  { %1862 = vsyncadd [#allocation9], 4294967024 }
  0x1d   :  { %1863 = dma.done.wait [#allocation12], 768  }
  0x1e   :  { %1864 = vsyncadd [#allocation12], 4294966528  ;;  %v1513_v0 = vld [vmem:[%s2180_s0] sm:$0xff]  ;;  %vm161_vm0 = vcmask 130048   ;;  %v180_v2 = vld [vmem:[#allocation5] sm:$0x3] }
  0x1f   :  { %v1512_v1 = vld [vmem:[#allocation2] sm:$0xff]  ;;  %172 = vmatpush.bf16.msra.mxu0 %v1513_v0  ;;  %vm189_vm1 = vcmask 1041408   ;;  %vm185_vm2 = vcmask 31744   ;;  %v1515_v7 = vld [vmem:[#allocation8 + $0x8] sm:$0xff]  ;;  %v1514_v8 = vld [vmem:[#allocation8] sm:$0xff]  ;;  %vm226_vm3 = vcmask 261120  }
  0x20   :  { %v191_v3 = vsel %vm189_vm1, %v180_v2, 0  ;;  %236 = vmatpush.bf16.msra.mxu2 %v1515_v7  ;;  %v1534_v10 = vld [vmem:[#allocation7] ss:$0 sm:$0xff]  ;;  %v1993_v22 = vld [vmem:[%s2187_s7] sm:$0xff]  ;;  %v1878_v24 = vmov 0   ;;  %s1880_s24 = smov [#allocation14]  }
  0x21   :  { %200 = vmatpush.bf16.msra.mxu1 %v191_v3  ;;  %v1517_v17 = vld [vmem:[#allocation11 + $0x8] sm:$0xff]  ;;  %v1516_v23 = vld [vmem:[#allocation11] sm:$0xff]  ;;  %v1535_v26 = vld [vmem:[#allocation10] ss:$0 sm:$0xff]  ;;  %s1424_s25 = sshll.u32 %s1880_s24, 4  ;;  %s1426_s26 = sshll.u32 %s2192_s12, 4  ;;  %s1425_s25 = int_to_ptr.vmem [resolvable:$true] %s1424_s25  ;;  %s1427_s26 = int_to_ptr.hbm [resolvable:$true] %s1426_s26 }
  0x22   :  { %1450 = vmatmul.msk.bf16.vlgmr.msra.gmra.mxu0 %vm161_vm0, %v1512_v1  ;;  %v1986_v21 = vld [vmem:[%s2187_s7 + $0x8] sm:$0xff]  ;;  %v265_v35 = vld [vmem:[%s2188_s8] sm:$0x1]  ;;  %s1879_s8 = smov 32  }
  0x23   :  { %297 = vmatpush.bf16.msrb.mxu0 %v1517_v17  ;;  %v266_v36 = vld [vmem:[%s2189_s9] sm:$0x1] }
  0x24   :  { %237 = vmatpush.bf16.msra.mxu2 %v1514_v8  ;;  %v2018_v37 = vadd.f32 %v266_v36, %v265_v35 }
  0x25   :  { %330 = vmatpush.bf16.msrb.mxu1 %v1986_v21 }
  0x26   :  { %v274_v38 = vperm.slane %v2018_v37, 0 }
  0x27   :  { %298 = vmatpush.bf16.msrb.mxu0 %v1516_v23 }
  0x28   :  { %454 = vmatpush.bf16.msrb.mxu2 %v1986_v21 }
  0x29   :  { %331 = vmatpush.bf16.msrb.mxu1 %v1993_v22 }
  0x2b   :  { %519 = vmatpush.bf16.msra.mxu0 %v1986_v21 }
  0x2c   :  { %455 = vmatpush.bf16.msrb.mxu2 %v1993_v22 }
  0x2f   :  { %520 = vmatpush.bf16.msra.mxu0 %v1993_v22 }
  0x9f   :  { %v174_v4 = vpop.f32.mrf.mxu0 }
  0xa7   :  { %v176_v5 = vpop.f32.mrf.mxu0 }
  0xa8   :  { %v179_v6 = vpack.c.bf16 %v176_v5, %v174_v4 }
  0xaa   :  { %1451 = vmatmul.msk.bf16.vlgmr.msra.gmra.mxu1 %vm185_vm2, %v179_v6 }
  0xab   :  { %586 = vmatpush.bf16.msra.mxu1 %v1986_v21 }
  0xaf   :  { %587 = vmatpush.bf16.msra.mxu1 %v1993_v22 }
  0xba   :  { %332 = vmatmul.bf16.vlgmr.msrb.gmra.mxu1 %v1878_v24 }
  0xbb   :  { %850 = vmatpush.bf16.msrb.mxu1 %v1986_v21 }
  0xbf   :  { %851 = vmatpush.bf16.msrb.mxu1 %v1993_v22 }
 0x127   :  { %v202_v9 = vpop.f32.mrf.mxu1 }
 0x128   :  { %v203_v11 = vadd.f32 %v1534_v10, %v202_v9 }
 0x12a   :  { %v207_v14 = vmax.f32 %v203_v11, 0.0 }
 0x12f   :  { %v204_v12 = vpop.f32.mrf.mxu1 }
 0x130   :  { %v205_v13 = vadd.f32 %v1534_v10, %v204_v12 }
 0x132   :  { %v208_v15 = vmax.f32 %v205_v13, 0.0 }
 0x134   :  { %v209_v16 = vpack.c.bf16 %v208_v15, %v207_v14 }
 0x136   :  { %1460 = vmatmul.msk.bf16.vlgmr.msra.gmra.mxu2 %vm226_vm3, %v209_v16 }
 0x137   :  { %718 = vmatpush.bf16.msra.mxu2 %v1986_v21  ;;  %v333_v33 = vpop.f32.mrf.mxu1 }
 0x13b   :  { %719 = vmatpush.bf16.msra.mxu2 %v1993_v22 }
 0x13f   :  { %v335_v34 = vpop.f32.mrf.mxu1 }
 0x1b9   :  { %v239_v18 = vpop.f32.mrf.mxu2 }
 0x1c1   :  { %v241_v19 = vpop.f32.mrf.mxu2 }
 0x1c2   :  { %v244_v20 = vpack.c.bf16 %v241_v19, %v239_v18 }
 0x1c4   :  { %256 = vmatpush.bf16.msra.mxu3 %v244_v20 }
 0x1c7   :  { %1461 = vmatmul.msk.bf16.vlgmr.msra.gmra.mxu3 %vm161_vm0, %v1512_v1  ;;  %vm1357_vm0 = vcmask 1040384  }
 0x1c8   :  { %388 = vmatpush.bf16.msrb.mxu3 %v1986_v21 }
 0x1cc   :  { %389 = vmatpush.bf16.msrb.mxu3 %v1993_v22 }
 0x1d0   :  { %651 = vmatpush.bf16.msra.mxu3 %v1986_v21 }
 0x1d4   :  { %652 = vmatpush.bf16.msra.mxu3 %v1993_v22 }
 0x24a   :  { %v258_v25 = vpop.f32.mrf.mxu3 }
 0x24b   :  { %v259_v27 = vadd.f32 %v1535_v26, %v258_v25 }
 0x24d   :  { %v263_v30 = vmax.f32 %v259_v27, 0.0 }
 0x252   :  { %v260_v28 = vpop.f32.mrf.mxu3 }
 0x253   :  { %v261_v29 = vadd.f32 %v1535_v26, %v260_v28 }
 0x255   :  { %v264_v31 = vmax.f32 %v261_v29, 0.0 }
 0x257   :  { %v268_v32 = vpack.c.bf16 %v264_v31, %v263_v30 }
 0x259   :  { %1470 = vmatmul.msk.bf16.vlgmr.msrb.gmra.mxu0 %vm226_vm3, %v268_v32 }
 0x25a   :  { %783 = vmatpush.bf16.msrb.mxu0 %v1986_v21 }
 0x25e   :  { %784 = vmatpush.bf16.msrb.mxu0 %v1993_v22 }
 0x2d6   :  { %v300_v39 = vpop.f32.mrf.mxu0 }
 0x2d7   :  { %v2023_v40 = vadd.f32 %v300_v39, %v274_v38 }
 0x2d9   :  { %v337_v41 = vadd.f32 %v333_v33, %v2023_v40 }
 0x2db   :  { %1537 = vtanh.f32 %v337_v41  ;;  %v1479_v43 = vmul.f32 -1.442695, %v337_v41 }
 0x2dd   :  { %1539 = vpow2.f32 %v1479_v43 }
 0x2e1   :  { %v1538_v42 = vpop.eup %1537 }
 0x2e2   :  { %360 = vrot.lane.b32.xlu0 %v1538_v42, %s1869_s2 }
 0x2e3   :  { %v1540_v44 = vpop.eup %1539 }
 0x2e4   :  { %v341_v45 = vadd.f32 1.0, %v1540_v44 }
 0x2e6   :  { %1541 = vrcp.f32 %v341_v45  ;;  %v353_v51 = vand.u32 2147483648, %v341_v45  ;;  %vm347_vm5 = vweird.f32 %v341_v45  ;;  %v351_v52 = vand.u32 2147483647, %v341_v45 }
 0x2e8   :  { %v354_v54 = vor.u32 1.1754944e-38, %v353_v51  ;;  %vm352_vm7 = vcmp.eq.f32.partialorder %v351_v52, 8.507059e+37 }
 0x2ec   :  { %v1542_v46 = vpop.eup %1541 }
 0x2ed   :  { %v343_v47 = vmul.f32 %v1542_v46, %v341_v45  ;;  %vm348_vm4 = vweird.f32 %v1542_v46 }
 0x2ee   :  { %vm349_vm6 = vmor %vm347_vm5, %vm348_vm4 }
 0x2ef   :  { %v344_v48 = vsub.f32 1.0, %v343_v47 }
 0x2f1   :  { %v345_v49 = vmul.f32 %v1542_v46, %v344_v48 }
 0x2f3   :  { %v346_v50 = vadd.f32 %v1542_v46, %v345_v49 }
 0x2f5   :  { %v350_v53 = vsel %vm349_vm6, %v1542_v46, %v346_v50 }
 0x2f6   :  { %v355_v56 = vsel %vm352_vm7, %v354_v54, %v350_v53  ;;  %vm1360_vm7 = vcmask 1042432  }
 0x2f7   :  { %v358_v58 = vmul.f32 0.0, %v355_v56 }
 0x354   :  { %v361_v55 = vpop.permute.xlu0 %360 }
 0x355   :  { %v363_v57 = vmul.f32 %v361_v55, %v355_v56 }
 0x357   :  { %365 = vrot.lane.b32.xlu0 %v363_v57, %s1879_s8 }
 0x3c9   :  { %v366_v59 = vpop.permute.xlu0 %365 }
 0x3ca   :  { %v368_v60 = vadd.f32 %v366_v59, %v358_v58 }
 0x3cc   :  { %1543 = vtanh.f32 %v368_v60  ;;  %v420_v24 = vrot.slane %v368_v60, 7 }
 0x3d2   :  { %v1544_v61 = vpop.eup %1543 }
 0x3d3   :  { %371 = vrot.lane.b32.xlu1 %v1544_v61, %s1869_s2 }
 0x445   :  { %v372_v62 = vpop.permute.xlu1 %371 }
 0x446   :  { %v2029_v63 = vmul.f32 %v372_v62, %v355_v56 }
 0x448   :  { %v375_v0 = vpack.c.bf16 %v2029_v63, %v2029_v63 }
 0x44a   :  { %377 = vrot.lane.b32.xlu1 %v375_v0, %s1879_s8 }
 0x4bc   :  { %v378_v1 = vpop.permute.xlu1 %377 }
 0x4bd   :  { %1480 = vmatmul.msk.bf16.vlgmr.msrb.gmra.mxu3 %vm226_vm3, %v378_v1 }
 0x4be   :  { %911 = vmatpush.bf16.msrb.mxu3 %v1986_v21 }
 0x4c2   :  { %912 = vmatpush.bf16.msrb.mxu3 %v1993_v22 }
 0x540   :  { %v391_v2 = vpop.f32.mrf.mxu3 }
 0x541   :  { %v396_v3 = vrot.slane %v391_v2, 7 }
 0x543   :  { %v398_v4 = vadd.f32 %v396_v3, %v2023_v40 }
 0x545   :  { %1545 = vtanh.f32 %v398_v4  ;;  %v1481_v7 = vmul.f32 -1.442695, %v398_v4 }
 0x547   :  { %1547 = vpow2.f32 %v1481_v7 }
 0x548   :  { %v393_v5 = vpop.f32.mrf.mxu3 }
 0x54b   :  { %v1546_v6 = vpop.eup %1545 }
 0x54c   :  { %424 = vrot.lane.b32.xlu2 %v1546_v6, %s1869_s2  ;;  %v2056_v6 = vpop.f32.mrf.mxu0 }
 0x54d   :  { %v1548_v8 = vpop.eup %1547 }
 0x54e   :  { %v402_v9 = vadd.f32 1.0, %v1548_v8 }
 0x550   :  { %1549 = vrcp.f32 %v402_v9  ;;  %v414_v15 = vand.u32 2147483648, %v402_v9  ;;  %vm408_vm9 = vweird.f32 %v402_v9  ;;  %v412_v16 = vand.u32 2147483647, %v402_v9 }
 0x552   :  { %v415_v18 = vor.u32 1.1754944e-38, %v414_v15  ;;  %vm413_vm11 = vcmp.eq.f32.partialorder %v412_v16, 8.507059e+37 }
 0x556   :  { %v1550_v10 = vpop.eup %1549 }
 0x557   :  { %v404_v11 = vmul.f32 %v1550_v10, %v402_v9  ;;  %vm409_vm8 = vweird.f32 %v1550_v10 }
 0x558   :  { %vm410_vm10 = vmor %vm408_vm9, %vm409_vm8 }
 0x559   :  { %v405_v12 = vsub.f32 1.0, %v404_v11 }
 0x55b   :  { %v406_v13 = vmul.f32 %v1550_v10, %v405_v12 }
 0x55d   :  { %v407_v14 = vadd.f32 %v1550_v10, %v406_v13 }
 0x55f   :  { %v411_v17 = vsel %vm410_vm10, %v1550_v10, %v407_v14 }
 0x560   :  { %v416_v20 = vsel %vm413_vm11, %v415_v18, %v411_v17 }
 0x561   :  { %v422_v25 = vmul.f32 %v420_v24, %v416_v20 }
 0x5a6   :  { %v425_v19 = vpop.permute.xlu2 %424 }
 0x5a7   :  { %v427_v23 = vmul.f32 %v425_v19, %v416_v20 }
 0x5a9   :  { %429 = vrot.lane.b32.xlu2 %v427_v23, %s1879_s8 }
 0x603   :  { %v430_v26 = vpop.permute.xlu2 %429 }
 0x604   :  { %v432_v27 = vadd.f32 %v430_v26, %v422_v25 }
 0x606   :  { %1551 = vtanh.f32 %v432_v27  ;;  %v486_v57 = vrot.slane %v432_v27, 7 }
 0x60c   :  { %v1552_v28 = vpop.eup %1551 }
 0x60d   :  { %435 = vrot.lane.b32.xlu0 %v1552_v28, %s1869_s2 }
 0x67f   :  { %v436_v29 = vpop.permute.xlu0 %435 }
 0x680   :  { %v438_v30 = vmul.f32 %v436_v29, %v416_v20 }
 0x682   :  { %v439_v31 = vpack.c.bf16 %v438_v30, %v438_v30  ;;  %v1358_v1 = vsel %vm1357_vm0, %v2029_v63, %v438_v30 }
 0x684   :  { %v441_v32 = vshrl.u32 %v439_v31, 16 }
 0x686   :  { %443 = vrot.lane.b32.xlu1 %v441_v32, %s1879_s8 }
 0x6f8   :  { %v444_v33 = vpop.permute.xlu1 %443 }
 0x6f9   :  { %1482 = vmatmul.msk.bf16.vlgmr.msrb.gmra.mxu2 %vm226_vm3, %v444_v33 }
 0x6fa   :  { %977 = vmatpush.bf16.msrb.mxu2 %v1986_v21 }
 0x6fe   :  { %978 = vmatpush.bf16.msrb.mxu2 %v1993_v22 }
 0x77c   :  { %v457_v34 = vpop.f32.mrf.mxu2 }
 0x77d   :  { %v462_v35 = vrot.slane %v457_v34, 6 }
 0x77f   :  { %v464_v36 = vadd.f32 %v462_v35, %v2023_v40 }
 0x781   :  { %1553 = vtanh.f32 %v464_v36  ;;  %v1483_v42 = vmul.f32 -1.442695, %v464_v36 }
 0x783   :  { %1555 = vpow2.f32 %v1483_v42 }
 0x784   :  { %v459_v39 = vpop.f32.mrf.mxu2 }
 0x787   :  { %v1554_v41 = vpop.eup %1553 }
 0x788   :  { %490 = vrot.lane.b32.xlu2 %v1554_v41, %s1869_s2 }
 0x789   :  { %v1556_v43 = vpop.eup %1555 }
 0x78a   :  { %v468_v44 = vadd.f32 1.0, %v1556_v43 }
 0x78c   :  { %1557 = vrcp.f32 %v468_v44  ;;  %v480_v50 = vand.u32 2147483648, %v468_v44  ;;  %vm474_vm13 = vweird.f32 %v468_v44  ;;  %v478_v51 = vand.u32 2147483647, %v468_v44 }
 0x78e   :  { %v481_v53 = vor.u32 1.1754944e-38, %v480_v50  ;;  %vm479_vm15 = vcmp.eq.f32.partialorder %v478_v51, 8.507059e+37 }
 0x792   :  { %v1558_v45 = vpop.eup %1557 }
 0x793   :  { %v470_v46 = vmul.f32 %v1558_v45, %v468_v44  ;;  %vm475_vm12 = vweird.f32 %v1558_v45 }
 0x794   :  { %vm476_vm14 = vmor %vm474_vm13, %vm475_vm12  ;;  %vm1362_vm12 = vcmask 1043456  }
 0x795   :  { %v471_v47 = vsub.f32 1.0, %v470_v46 }
 0x797   :  { %v472_v48 = vmul.f32 %v1558_v45, %v471_v47 }
 0x799   :  { %v473_v49 = vadd.f32 %v1558_v45, %v472_v48 }
 0x79b   :  { %v477_v52 = vsel %vm476_vm14, %v1558_v45, %v473_v49 }
 0x79c   :  { %v482_v55 = vsel %vm479_vm15, %v481_v53, %v477_v52 }
 0x79d   :  { %v488_v58 = vmul.f32 %v486_v57, %v482_v55 }
 0x7e2   :  { %v491_v54 = vpop.permute.xlu2 %490 }
 0x7e3   :  { %v493_v56 = vmul.f32 %v491_v54, %v482_v55 }
 0x7e5   :  { %495 = vrot.lane.b32.xlu0 %v493_v56, %s1879_s8 }
 0x857   :  { %v496_v59 = vpop.permute.xlu0 %495 }
 0x858   :  { %v498_v60 = vadd.f32 %v496_v59, %v488_v58 }
 0x85a   :  { %1559 = vtanh.f32 %v498_v60  ;;  %v551_v28 = vrot.slane %v498_v60, 7 }
 0x860   :  { %v1560_v61 = vpop.eup %1559 }
 0x861   :  { %501 = vrot.lane.b32.xlu1 %v1560_v61, %s1869_s2 }
 0x8d3   :  { %v502_v62 = vpop.permute.xlu1 %501 }
 0x8d4   :  { %v504_v0 = vmul.f32 %v502_v62, %v482_v55 }
 0x8d6   :  { %v505_v2 = vpack.c.bf16 %v504_v0, %v504_v0  ;;  %v1359_v3 = vsel %vm189_vm1, %v1358_v1, %v504_v0 }
 0x8d8   :  { %v507_v4 = vrot.slane %v505_v2, 1 }
 0x8da   :  { %508 = vrot.lane.b32.xlu2 %v507_v4, %s1879_s8 }
 0x934   :  { %v509_v5 = vpop.permute.xlu2 %508 }
 0x935   :  { %1484 = vmatmul.msk.bf16.vlgmr.msra.gmra.mxu0 %vm226_vm3, %v509_v5 }
 0x936   :  { %1042 = vmatpush.bf16.msra.mxu0 %v1986_v21 }
 0x93a   :  { %1043 = vmatpush.bf16.msra.mxu0 %v1993_v22 }
 0x9b2   :  { %v522_v7 = vpop.f32.mrf.mxu0 }
 0x9b3   :  { %v527_v8 = vrot.slane %v522_v7, 5 }
 0x9b5   :  { %v529_v9 = vadd.f32 %v527_v8, %v2023_v40 }
 0x9b7   :  { %1561 = vtanh.f32 %v529_v9  ;;  %v1485_v11 = vmul.f32 -1.442695, %v529_v9 }
 0x9b9   :  { %1563 = vpow2.f32 %v1485_v11 }
 0x9ba   :  { %v524_v63 = vpop.f32.mrf.mxu0 }
 0x9bd   :  { %v1562_v10 = vpop.eup %1561 }
 0x9be   :  { %555 = vrot.lane.b32.xlu0 %v1562_v10, %s1869_s2 }
 0x9bf   :  { %v1564_v12 = vpop.eup %1563 }
 0x9c0   :  { %v533_v13 = vadd.f32 1.0, %v1564_v12 }
 0x9c2   :  { %1565 = vrcp.f32 %v533_v13  ;;  %v545_v19 = vand.u32 2147483648, %v533_v13  ;;  %vm539_vm4 = vweird.f32 %v533_v13  ;;  %v543_v20 = vand.u32 2147483647, %v533_v13 }
 0x9c4   :  { %v546_v24 = vor.u32 1.1754944e-38, %v545_v19  ;;  %vm544_vm6 = vcmp.eq.f32.partialorder %v543_v20, 8.507059e+37 }
 0x9c8   :  { %v1566_v14 = vpop.eup %1565 }
 0x9c9   :  { %v535_v15 = vmul.f32 %v1566_v14, %v533_v13  ;;  %vm540_vm2 = vweird.f32 %v1566_v14 }
 0x9ca   :  { %vm541_vm5 = vmor %vm539_vm4, %vm540_vm2  ;;  %vm1364_vm4 = vcmask 1044480  }
 0x9cb   :  { %v536_v16 = vsub.f32 1.0, %v535_v15 }
 0x9cd   :  { %v537_v17 = vmul.f32 %v1566_v14, %v536_v16 }
 0x9cf   :  { %v538_v18 = vadd.f32 %v1566_v14, %v537_v17 }
 0x9d1   :  { %v542_v23 = vsel %vm541_vm5, %v1566_v14, %v538_v18 }
 0x9d2   :  { %v547_v26 = vsel %vm544_vm6, %v546_v24, %v542_v23 }
 0x9d3   :  { %v553_v29 = vmul.f32 %v551_v28, %v547_v26 }
 0xa30   :  { %v556_v25 = vpop.permute.xlu0 %555 }
 0xa31   :  { %v558_v27 = vmul.f32 %v556_v25, %v547_v26 }
 0xa33   :  { %560 = vrot.lane.b32.xlu1 %v558_v27, %s1879_s8 }
 0xaa5   :  { %v561_v30 = vpop.permute.xlu1 %560 }
 0xaa6   :  { %v563_v31 = vadd.f32 %v561_v30, %v553_v29 }
 0xaa8   :  { %1567 = vtanh.f32 %v563_v31  ;;  %v618_v0 = vrot.slane %v563_v31, 7 }
 0xaae   :  { %v1568_v32 = vpop.eup %1567 }
 0xaaf   :  { %566 = vrot.lane.b32.xlu2 %v1568_v32, %s1869_s2 }
 0xb09   :  { %v567_v33 = vpop.permute.xlu2 %566 }
 0xb0a   :  { %v569_v34 = vmul.f32 %v567_v33, %v547_v26 }
 0xb0c   :  { %v570_v35 = vpack.c.bf16 %v569_v34, %v569_v34  ;;  %v1361_v36 = vsel %vm1360_vm7, %v1359_v3, %v569_v34 }
 0xb0e   :  { %v572_v39 = vshrl.u32 %v570_v35, 16 }
 0xb10   :  { %v574_v41 = vrot.slane %v572_v39, 1 }
 0xb12   :  { %575 = vrot.lane.b32.xlu0 %v574_v41, %s1879_s8 }
 0xb84   :  { %v576_v42 = vpop.permute.xlu0 %575 }
 0xb85   :  { %1486 = vmatmul.msk.bf16.vlgmr.msra.gmra.mxu1 %vm226_vm3, %v576_v42 }
 0xb86   :  { %1109 = vmatpush.bf16.msra.mxu1 %v1986_v21 }
 0xb8a   :  { %1110 = vmatpush.bf16.msra.mxu1 %v1993_v22 }
 0xc02   :  { %v589_v43 = vpop.f32.mrf.mxu1 }
 0xc03   :  { %v594_v44 = vrot.slane %v589_v43, 4 }
 0xc05   :  { %v596_v45 = vadd.f32 %v594_v44, %v2023_v40 }
 0xc07   :  { %1569 = vtanh.f32 %v596_v45  ;;  %v1487_v48 = vmul.f32 -1.442695, %v596_v45 }
 0xc09   :  { %1571 = vpow2.f32 %v1487_v48 }
 0xc0a   :  { %v591_v46 = vpop.f32.mrf.mxu1 }
 0xc0d   :  { %v1570_v47 = vpop.eup %1569 }
 0xc0e   :  { %622 = vrot.lane.b32.xlu1 %v1570_v47, %s1869_s2 }
 0xc0f   :  { %v1572_v49 = vpop.eup %1571 }
 0xc10   :  { %v600_v50 = vadd.f32 1.0, %v1572_v49 }
 0xc12   :  { %1573 = vrcp.f32 %v600_v50  ;;  %v612_v56 = vand.u32 2147483648, %v600_v50  ;;  %vm606_vm9 = vweird.f32 %v600_v50  ;;  %v610_v57 = vand.u32 2147483647, %v600_v50 }
 0xc14   :  { %v613_v59 = vor.u32 1.1754944e-38, %v612_v56  ;;  %vm611_vm11 = vcmp.eq.f32.partialorder %v610_v57, 8.507059e+37 }
 0xc18   :  { %v1574_v51 = vpop.eup %1573 }
 0xc19   :  { %v602_v52 = vmul.f32 %v1574_v51, %v600_v50  ;;  %vm607_vm8 = vweird.f32 %v1574_v51 }
 0xc1a   :  { %vm608_vm10 = vmor %vm606_vm9, %vm607_vm8 }
 0xc1b   :  { %v603_v53 = vsub.f32 1.0, %v602_v52 }
 0xc1d   :  { %v604_v54 = vmul.f32 %v1574_v51, %v603_v53 }
 0xc1f   :  { %v605_v55 = vadd.f32 %v1574_v51, %v604_v54 }
 0xc21   :  { %v609_v58 = vsel %vm608_vm10, %v1574_v51, %v605_v55  ;;  %vm1366_vm10 = vcmask 1045504  }
 0xc22   :  { %v614_v61 = vsel %vm611_vm11, %v613_v59, %v609_v58 }
 0xc23   :  { %v620_v1 = vmul.f32 %v618_v0, %v614_v61 }
 0xc80   :  { %v623_v60 = vpop.permute.xlu1 %622 }
 0xc81   :  { %v625_v62 = vmul.f32 %v623_v60, %v614_v61 }
 0xc83   :  { %627 = vrot.lane.b32.xlu2 %v625_v62, %s1879_s8 }
 0xcdd   :  { %v628_v2 = vpop.permute.xlu2 %627 }
 0xcde   :  { %v630_v3 = vadd.f32 %v628_v2, %v620_v1 }
 0xce0   :  { %1575 = vtanh.f32 %v630_v3  ;;  %v683_v33 = vrot.slane %v630_v3, 7 }
 0xce6   :  { %v1576_v4 = vpop.eup %1575 }
 0xce7   :  { %633 = vrot.lane.b32.xlu0 %v1576_v4, %s1869_s2 }
 0xd59   :  { %v634_v5 = vpop.permute.xlu0 %633 }
 0xd5a   :  { %v636_v7 = vmul.f32 %v634_v5, %v614_v61 }
 0xd5c   :  { %v637_v8 = vpack.c.bf16 %v636_v7, %v636_v7  ;;  %v1363_v9 = vsel %vm1362_vm12, %v1361_v36, %v636_v7 }
 0xd5e   :  { %v639_v63 = vrot.slane %v637_v8, 2 }
 0xd60   :  { %640 = vrot.lane.b32.xlu1 %v639_v63, %s1879_s8 }
 0xdd2   :  { %v641_v10 = vpop.permute.xlu1 %640 }
 0xdd3   :  { %1488 = vmatmul.msk.bf16.vlgmr.msra.gmra.mxu3 %vm226_vm3, %v641_v10 }
 0xdd4   :  { %1174 = vmatpush.bf16.msra.mxu3 %v1986_v21 }
 0xdd8   :  { %1175 = vmatpush.bf16.msra.mxu3 %v1993_v22 }
 0xe56   :  { %v654_v11 = vpop.f32.mrf.mxu3 }
 0xe57   :  { %v659_v12 = vrot.slane %v654_v11, 3 }
 0xe59   :  { %v661_v13 = vadd.f32 %v659_v12, %v2023_v40 }
 0xe5b   :  { %1577 = vtanh.f32 %v661_v13  ;;  %v1489_v16 = vmul.f32 -1.442695, %v661_v13 }
 0xe5d   :  { %1579 = vpow2.f32 %v1489_v16 }
 0xe5e   :  { %v656_v14 = vpop.f32.mrf.mxu3 }
 0xe61   :  { %v1578_v15 = vpop.eup %1577 }
 0xe62   :  { %687 = vrot.lane.b32.xlu2 %v1578_v15, %s1869_s2 }
 0xe63   :  { %v1580_v17 = vpop.eup %1579 }
 0xe64   :  { %v665_v18 = vadd.f32 1.0, %v1580_v17 }
 0xe66   :  { %1581 = vrcp.f32 %v665_v18  ;;  %v677_v26 = vand.u32 2147483648, %v665_v18  ;;  %vm671_vm14 = vweird.f32 %v665_v18  ;;  %v675_v27 = vand.u32 2147483647, %v665_v18 }
 0xe68   :  { %v678_v29 = vor.u32 1.1754944e-38, %v677_v26  ;;  %vm676_vm2 = vcmp.eq.f32.partialorder %v675_v27, 8.507059e+37 }
 0xe6c   :  { %v1582_v19 = vpop.eup %1581 }
 0xe6d   :  { %v667_v20 = vmul.f32 %v1582_v19, %v665_v18  ;;  %vm672_vm13 = vweird.f32 %v1582_v19 }
 0xe6e   :  { %vm673_vm15 = vmor %vm671_vm14, %vm672_vm13 }
 0xe6f   :  { %v668_v23 = vsub.f32 1.0, %v667_v20 }
 0xe71   :  { %v669_v24 = vmul.f32 %v1582_v19, %v668_v23 }
 0xe73   :  { %v670_v25 = vadd.f32 %v1582_v19, %v669_v24 }
 0xe75   :  { %v674_v28 = vsel %vm673_vm15, %v1582_v19, %v670_v25 }
 0xe76   :  { %v679_v31 = vsel %vm676_vm2, %v678_v29, %v674_v28  ;;  %vm1368_vm2 = vcmask 1046528  }
 0xe77   :  { %v685_v34 = vmul.f32 %v683_v33, %v679_v31 }
 0xebc   :  { %v688_v30 = vpop.permute.xlu2 %687 }
 0xebd   :  { %v690_v32 = vmul.f32 %v688_v30, %v679_v31 }
 0xebf   :  { %692 = vrot.lane.b32.xlu0 %v690_v32, %s1879_s8 }
 0xf31   :  { %v693_v35 = vpop.permute.xlu0 %692 }
 0xf32   :  { %v695_v36 = vadd.f32 %v693_v35, %v685_v34 }
 0xf34   :  { %1583 = vtanh.f32 %v695_v36  ;;  %v750_v5 = vrot.slane %v695_v36, 7 }
 0xf3a   :  { %v1584_v39 = vpop.eup %1583 }
 0xf3b   :  { %698 = vrot.lane.b32.xlu1 %v1584_v39, %s1869_s2 }
 0xfad   :  { %v699_v41 = vpop.permute.xlu1 %698 }
 0xfae   :  { %v701_v42 = vmul.f32 %v699_v41, %v679_v31 }
 0xfb0   :  { %v702_v43 = vpack.c.bf16 %v701_v42, %v701_v42  ;;  %v1365_v44 = vsel %vm1364_vm4, %v1363_v9, %v701_v42 }
 0xfb2   :  { %v704_v45 = vshrl.u32 %v702_v43, 16 }
 0xfb4   :  { %v706_v46 = vrot.slane %v704_v45, 2 }
 0xfb6   :  { %707 = vrot.lane.b32.xlu2 %v706_v46, %s1879_s8 }
0x1010   :  { %v708_v47 = vpop.permute.xlu2 %707 }
0x1011   :  { %1490 = vmatmul.msk.bf16.vlgmr.msra.gmra.mxu2 %vm226_vm3, %v708_v47 }
0x1012   :  { %1241 = vmatpush.bf16.msra.mxu2 %v1986_v21 }
0x1016   :  { %1242 = vmatpush.bf16.msra.mxu2 %v1993_v22 }
0x1094   :  { %v721_v48 = vpop.f32.mrf.mxu2 }
0x1095   :  { %v726_v49 = vrot.slane %v721_v48, 2 }
0x1097   :  { %v728_v50 = vadd.f32 %v726_v49, %v2023_v40 }
0x1099   :  { %1585 = vtanh.f32 %v728_v50  ;;  %v1491_v53 = vmul.f32 -1.442695, %v728_v50  ;;  %v2106_v50 = vadd.f32 %v2056_v6, %v274_v38 }
0x109b   :  { %1587 = vpow2.f32 %v1491_v53 }
0x109c   :  { %v723_v51 = vpop.f32.mrf.mxu2 }
0x109f   :  { %v1586_v52 = vpop.eup %1585 }
0x10a0   :  { %754 = vrot.lane.b32.xlu0 %v1586_v52, %s1869_s2 }
0x10a1   :  { %v1588_v54 = vpop.eup %1587 }
0x10a2   :  { %v732_v55 = vadd.f32 1.0, %v1588_v54 }
0x10a4   :  { %1589 = vrcp.f32 %v732_v55  ;;  %v744_v61 = vand.u32 2147483648, %v732_v55  ;;  %vm738_vm6 = vweird.f32 %v732_v55  ;;  %v742_v62 = vand.u32 2147483647, %v732_v55 }
0x10a6   :  { %v745_v1 = vor.u32 1.1754944e-38, %v744_v61  ;;  %vm743_vm9 = vcmp.eq.f32.partialorder %v742_v62, 8.507059e+37 }
0x10aa   :  { %v1590_v56 = vpop.eup %1589 }
0x10ab   :  { %v734_v57 = vmul.f32 %v1590_v56, %v732_v55  ;;  %vm739_vm5 = vweird.f32 %v1590_v56 }
0x10ac   :  { %vm740_vm8 = vmor %vm738_vm6, %vm739_vm5 }
0x10ad   :  { %v735_v58 = vsub.f32 1.0, %v734_v57 }
0x10af   :  { %v736_v59 = vmul.f32 %v1590_v56, %v735_v58 }
0x10b1   :  { %v737_v60 = vadd.f32 %v1590_v56, %v736_v59 }
0x10b3   :  { %v741_v0 = vsel %vm740_vm8, %v1590_v56, %v737_v60 }
0x10b4   :  { %v746_v3 = vsel %vm743_vm9, %v745_v1, %v741_v0 }
0x10b5   :  { %v752_v7 = vmul.f32 %v750_v5, %v746_v3 }
0x1112   :  { %v755_v2 = vpop.permute.xlu0 %754 }
0x1113   :  { %v757_v4 = vmul.f32 %v755_v2, %v746_v3 }
0x1115   :  { %759 = vrot.lane.b32.xlu1 %v757_v4, %s1879_s8 }
0x1187   :  { %v760_v8 = vpop.permute.xlu1 %759 }
0x1188   :  { %v762_v9 = vadd.f32 %v760_v8, %v752_v7 }
0x118a   :  { %1591 = vtanh.f32 %v762_v9  ;;  %v815_v35 = vrot.slane %v762_v9, 7 }
0x1190   :  { %v1592_v63 = vpop.eup %1591 }
0x1191   :  { %765 = vrot.lane.b32.xlu2 %v1592_v63, %s1869_s2 }
0x11eb   :  { %v766_v10 = vpop.permute.xlu2 %765 }
0x11ec   :  { %v768_v11 = vmul.f32 %v766_v10, %v746_v3 }
0x11ee   :  { %v769_v12 = vpack.c.bf16 %v768_v11, %v768_v11  ;;  %v1367_v13 = vsel %vm1366_vm10, %v1365_v44, %v768_v11 }
0x11f0   :  { %v771_v14 = vrot.slane %v769_v12, 3 }
0x11f2   :  { %772 = vrot.lane.b32.xlu0 %v771_v14, %s1879_s8 }
0x1264   :  { %v773_v15 = vpop.permute.xlu0 %772 }
0x1265   :  { %1492 = vmatmul.msk.bf16.vlgmr.msrb.gmra.mxu0 %vm226_vm3, %v773_v15 }
0x1266   :  { %1306 = vmatpush.bf16.msrb.mxu0 %v1986_v21 }
0x126a   :  { %1307 = vmatpush.bf16.msrb.mxu0 %v1993_v22 }
0x12e2   :  { %v786_v16 = vpop.f32.mrf.mxu0 }
0x12e3   :  { %v791_v17 = vrot.slane %v786_v16, 1 }
0x12e5   :  { %v793_v18 = vadd.f32 %v791_v17, %v2023_v40 }
0x12e7   :  { %1593 = vtanh.f32 %v793_v18  ;;  %v1493_v23 = vmul.f32 -1.442695, %v793_v18 }
0x12e9   :  { %1595 = vpow2.f32 %v1493_v23 }
0x12ea   :  { %v788_v19 = vpop.f32.mrf.mxu0 }
0x12ed   :  { %v1594_v20 = vpop.eup %1593 }
0x12ee   :  { %819 = vrot.lane.b32.xlu1 %v1594_v20, %s1869_s2 }
0x12ef   :  { %v1596_v24 = vpop.eup %1595 }
0x12f0   :  { %v797_v25 = vadd.f32 1.0, %v1596_v24 }
0x12f2   :  { %1597 = vrcp.f32 %v797_v25  ;;  %v809_v22 = vand.u32 2147483648, %v797_v25  ;;  %vm803_vm13 = vweird.f32 %v797_v25  ;;  %v807_v30 = vand.u32 2147483647, %v797_v25 }
0x12f4   :  { %v810_v31 = vor.u32 1.1754944e-38, %v809_v22  ;;  %vm808_vm15 = vcmp.eq.f32.partialorder %v807_v30, 8.507059e+37 }
0x12f8   :  { %v1598_v26 = vpop.eup %1597 }
0x12f9   :  { %v799_v27 = vmul.f32 %v1598_v26, %v797_v25  ;;  %vm804_vm11 = vweird.f32 %v1598_v26 }
0x12fa   :  { %vm805_vm14 = vmor %vm803_vm13, %vm804_vm11 }
0x12fb   :  { %v800_v28 = vsub.f32 1.0, %v799_v27 }
0x12fd   :  { %v801_v21 = vmul.f32 %v1598_v26, %v800_v28 }
0x12ff   :  { %v802_v29 = vadd.f32 %v1598_v26, %v801_v21 }
0x1301   :  { %v806_v40 = vsel %vm805_vm14, %v1598_v26, %v802_v29 }
0x1302   :  { %v811_v33 = vsel %vm808_vm15, %v810_v31, %v806_v40 }
0x1303   :  { %v817_v36 = vmul.f32 %v815_v35, %v811_v33 }
0x1360   :  { %v820_v32 = vpop.permute.xlu1 %819 }
0x1361   :  { %v822_v34 = vmul.f32 %v820_v32, %v811_v33 }
0x1363   :  { %824 = vrot.lane.b32.xlu2 %v822_v34, %s1879_s8 }
0x13bd   :  { %v825_v39 = vpop.permute.xlu2 %824 }
0x13be   :  { %v827_v41 = vadd.f32 %v825_v39, %v817_v36 }
0x13c0   :  { %1599 = vtanh.f32 %v827_v41  ;;  %v879_v4 = vrot.slane %v827_v41, 7 }
0x13c6   :  { %v1600_v42 = vpop.eup %1599 }
0x13c7   :  { %830 = vrot.lane.b32.xlu0 %v1600_v42, %s1869_s2 }
0x1439   :  { %v831_v43 = vpop.permute.xlu0 %830 }
0x143a   :  { %v833_v44 = vmul.f32 %v831_v43, %v811_v33 }
0x143c   :  { %v834_v45 = vpack.c.bf16 %v833_v44, %v833_v44  ;;  %v2099_v46 = vsel %vm1368_vm2, %v1367_v13, %v833_v44 }
0x143e   :  { %v836_v47 = vshrl.u32 %v834_v45, 16 }
0x1440   :  { %v838_v48 = vrot.slane %v836_v47, 3 }
0x1442   :  { %839 = vrot.lane.b32.xlu1 %v838_v48, %s1879_s8 }
0x14b4   :  { %v840_v49 = vpop.permute.xlu1 %839 }
0x14b5   :  { %1494 = vmatmul.msk.bf16.vlgmr.msrb.gmra.mxu1 %vm226_vm3, %v840_v49 }
0x1532   :  { %v853_v51 = vpop.f32.mrf.mxu1 }
0x1533   :  { %v857_v52 = vadd.f32 %v853_v51, %v2106_v50 }
0x1535   :  { %1601 = vtanh.f32 %v857_v52  ;;  %v1495_v55 = vmul.f32 -1.442695, %v857_v52 }
0x1537   :  { %1603 = vpow2.f32 %v1495_v55 }
0x153a   :  { %v855_v53 = vpop.f32.mrf.mxu1 }
0x153b   :  { %v1602_v54 = vpop.eup %1601 }
0x153c   :  { %883 = vrot.lane.b32.xlu2 %v1602_v54, %s1869_s2 }
0x153d   :  { %v1604_v56 = vpop.eup %1603 }
0x153e   :  { %v861_v57 = vadd.f32 1.0, %v1604_v56 }
0x1540   :  { %1605 = vrcp.f32 %v861_v57  ;;  %v873_v38 = vand.u32 2147483648, %v861_v57  ;;  %vm867_vm6 = vweird.f32 %v861_v57  ;;  %v871_v6 = vand.u32 2147483647, %v861_v57 }
0x1542   :  { %v874_v0 = vor.u32 1.1754944e-38, %v873_v38  ;;  %vm872_vm9 = vcmp.eq.f32.partialorder %v871_v6, 8.507059e+37 }
0x1546   :  { %v1606_v58 = vpop.eup %1605 }
0x1547   :  { %v863_v59 = vmul.f32 %v1606_v58, %v861_v57  ;;  %vm868_vm5 = vweird.f32 %v1606_v58 }
0x1548   :  { %vm869_vm8 = vmor %vm867_vm6, %vm868_vm5 }
0x1549   :  { %v864_v60 = vsub.f32 1.0, %v863_v59 }
0x154b   :  { %v865_v37 = vmul.f32 %v1606_v58, %v864_v60 }
0x154d   :  { %v866_v61 = vadd.f32 %v1606_v58, %v865_v37 }
0x154f   :  { %v870_v62 = vsel %vm869_vm8, %v1606_v58, %v866_v61 }
0x1550   :  { %v875_v2 = vsel %vm872_vm9, %v874_v0, %v870_v62 }
0x1551   :  { %v881_v5 = vmul.f32 %v879_v4, %v875_v2 }
0x1596   :  { %v884_v1 = vpop.permute.xlu2 %883 }
0x1597   :  { %v886_v3 = vmul.f32 %v884_v1, %v875_v2 }
0x1599   :  { %888 = vrot.lane.b32.xlu0 %v886_v3, %s1879_s8 }
0x160b   :  { %v889_v7 = vpop.permute.xlu0 %888 }
0x160c   :  { %v891_v8 = vadd.f32 %v889_v7, %v881_v5 }
0x160e   :  { %1607 = vtanh.f32 %v891_v8  ;;  %v943_v32 = vrot.slane %v891_v8, 7 }
0x1614   :  { %v1608_v9 = vpop.eup %1607 }
0x1615   :  { %894 = vrot.lane.b32.xlu1 %v1608_v9, %s1869_s2 }
0x1687   :  { %v895_v63 = vpop.permute.xlu1 %894 }
0x1688   :  { %v2112_v10 = vmul.f32 %v895_v63, %v875_v2 }
0x168a   :  { %v898_v11 = vpack.c.bf16 %v2112_v10, %v2112_v10 }
0x168c   :  { %900 = vrot.lane.b32.xlu2 %v898_v11, %s1879_s8 }
0x16e6   :  { %v901_v12 = vpop.permute.xlu2 %900 }
0x16e7   :  { %1496 = vmatmul.msk.bf16.vlgmr.msrb.gmra.mxu3 %vm226_vm3, %v901_v12 }
0x176a   :  { %v914_v13 = vpop.f32.mrf.mxu3 }
0x176b   :  { %v919_v14 = vrot.slane %v914_v13, 7 }
0x176d   :  { %v921_v15 = vadd.f32 %v919_v14, %v2106_v50 }
0x176f   :  { %1609 = vtanh.f32 %v921_v15  ;;  %v1497_v18 = vmul.f32 -1.442695, %v921_v15 }
0x1771   :  { %1611 = vpow2.f32 %v1497_v18 }
0x1772   :  { %v916_v16 = vpop.f32.mrf.mxu3 }
0x1775   :  { %v1610_v17 = vpop.eup %1609 }
0x1776   :  { %947 = vrot.lane.b32.xlu0 %v1610_v17, %s1869_s2 }
0x1777   :  { %v1612_v19 = vpop.eup %1611 }
0x1778   :  { %v925_v20 = vadd.f32 1.0, %v1612_v19 }
0x177a   :  { %1613 = vrcp.f32 %v925_v20  ;;  %v937_v28 = vand.u32 2147483648, %v925_v20  ;;  %vm931_vm13 = vweird.f32 %v925_v20  ;;  %v935_v21 = vand.u32 2147483647, %v925_v20 }
0x177c   :  { %v938_v22 = vor.u32 1.1754944e-38, %v937_v28  ;;  %vm936_vm15 = vcmp.eq.f32.partialorder %v935_v21, 8.507059e+37 }
0x1780   :  { %v1614_v23 = vpop.eup %1613 }
0x1781   :  { %v927_v24 = vmul.f32 %v1614_v23, %v925_v20  ;;  %vm932_vm11 = vweird.f32 %v1614_v23 }
0x1782   :  { %vm933_vm14 = vmor %vm931_vm13, %vm932_vm11 }
0x1783   :  { %v928_v25 = vsub.f32 1.0, %v927_v24 }
0x1785   :  { %v929_v26 = vmul.f32 %v1614_v23, %v928_v25 }
0x1787   :  { %v930_v27 = vadd.f32 %v1614_v23, %v929_v26 }
0x1789   :  { %v934_v29 = vsel %vm933_vm14, %v1614_v23, %v930_v27 }
0x178a   :  { %v939_v40 = vsel %vm936_vm15, %v938_v22, %v934_v29 }
0x178b   :  { %v945_v33 = vmul.f32 %v943_v32, %v939_v40 }
0x17e8   :  { %v948_v30 = vpop.permute.xlu0 %947 }
0x17e9   :  { %v950_v31 = vmul.f32 %v948_v30, %v939_v40 }
0x17eb   :  { %952 = vrot.lane.b32.xlu1 %v950_v31, %s1879_s8 }
0x185d   :  { %v953_v34 = vpop.permute.xlu1 %952 }
0x185e   :  { %v955_v35 = vadd.f32 %v953_v34, %v945_v33 }
0x1860   :  { %1615 = vtanh.f32 %v955_v35  ;;  %v1009_v1 = vrot.slane %v955_v35, 7 }
0x1866   :  { %v1616_v36 = vpop.eup %1615 }
0x1867   :  { %958 = vrot.lane.b32.xlu2 %v1616_v36, %s1869_s2 }
0x18c1   :  { %v959_v39 = vpop.permute.xlu2 %958 }
0x18c2   :  { %v961_v41 = vmul.f32 %v959_v39, %v939_v40 }
0x18c4   :  { %v962_v42 = vpack.c.bf16 %v961_v41, %v961_v41  ;;  %v1370_v9 = vsel %vm1357_vm0, %v2112_v10, %v961_v41 }
0x18c6   :  { %v964_v43 = vshrl.u32 %v962_v42, 16 }
0x18c8   :  { %966 = vrot.lane.b32.xlu0 %v964_v43, %s1879_s8 }
0x193a   :  { %v967_v44 = vpop.permute.xlu0 %966 }
0x193b   :  { %1498 = vmatmul.msk.bf16.vlgmr.msrb.gmra.mxu2 %vm226_vm3, %v967_v44 }
0x19be   :  { %v980_v45 = vpop.f32.mrf.mxu2 }
0x19bf   :  { %v985_v47 = vrot.slane %v980_v45, 6 }
0x19c1   :  { %v987_v48 = vadd.f32 %v985_v47, %v2106_v50 }
0x19c3   :  { %1617 = vtanh.f32 %v987_v48  ;;  %v1499_v52 = vmul.f32 -1.442695, %v987_v48 }
0x19c5   :  { %1619 = vpow2.f32 %v1499_v52 }
0x19c6   :  { %v982_v49 = vpop.f32.mrf.mxu2 }
0x19c9   :  { %v1618_v51 = vpop.eup %1617 }
0x19ca   :  { %1013 = vrot.lane.b32.xlu1 %v1618_v51, %s1869_s2 }
0x19cb   :  { %v1620_v53 = vpop.eup %1619 }
0x19cc   :  { %v991_v54 = vadd.f32 1.0, %v1620_v53 }
0x19ce   :  { %1621 = vrcp.f32 %v991_v54  ;;  %v1003_v60 = vand.u32 2147483648, %v991_v54  ;;  %vm997_vm6 = vweird.f32 %v991_v54  ;;  %v1001_v37 = vand.u32 2147483647, %v991_v54 }
0x19d0   :  { %v1004_v38 = vor.u32 1.1754944e-38, %v1003_v60  ;;  %vm1002_vm9 = vcmp.eq.f32.partialorder %v1001_v37, 8.507059e+37 }
0x19d4   :  { %v1622_v55 = vpop.eup %1621 }
0x19d5   :  { %v993_v56 = vmul.f32 %v1622_v55, %v991_v54  ;;  %vm998_vm5 = vweird.f32 %v1622_v55 }
0x19d6   :  { %vm999_vm8 = vmor %vm997_vm6, %vm998_vm5 }
0x19d7   :  { %v994_v57 = vsub.f32 1.0, %v993_v56 }
0x19d9   :  { %v995_v58 = vmul.f32 %v1622_v55, %v994_v57 }
0x19db   :  { %v996_v59 = vadd.f32 %v1622_v55, %v995_v58 }
0x19dd   :  { %v1000_v61 = vsel %vm999_vm8, %v1622_v55, %v996_v59 }
0x19de   :  { %v1005_v62 = vsel %vm1002_vm9, %v1004_v38, %v1000_v61 }
0x19df   :  { %v1011_v2 = vmul.f32 %v1009_v1, %v1005_v62 }
0x1a3c   :  { %v1014_v6 = vpop.permute.xlu1 %1013 }
0x1a3d   :  { %v1016_v0 = vmul.f32 %v1014_v6, %v1005_v62 }
0x1a3f   :  { %1018 = vrot.lane.b32.xlu2 %v1016_v0, %s1879_s8 }
0x1a99   :  { %v1019_v3 = vpop.permute.xlu2 %1018 }
0x1a9a   :  { %v1021_v4 = vadd.f32 %v1019_v3, %v1011_v2 }
0x1a9c   :  { %1623 = vtanh.f32 %v1021_v4  ;;  %v1074_v32 = vrot.slane %v1021_v4, 7 }
0x1aa2   :  { %v1624_v5 = vpop.eup %1623 }
0x1aa3   :  { %1024 = vrot.lane.b32.xlu0 %v1624_v5, %s1869_s2 }
0x1b15   :  { %v1025_v7 = vpop.permute.xlu0 %1024 }
0x1b16   :  { %v1027_v8 = vmul.f32 %v1025_v7, %v1005_v62 }
0x1b18   :  { %v1028_v63 = vpack.c.bf16 %v1027_v8, %v1027_v8  ;;  %v1371_v11 = vsel %vm189_vm1, %v1370_v9, %v1027_v8 }
0x1b1a   :  { %v1030_v12 = vrot.slane %v1028_v63, 1 }
0x1b1c   :  { %1031 = vrot.lane.b32.xlu1 %v1030_v12, %s1879_s8 }
0x1b8e   :  { %v1032_v13 = vpop.permute.xlu1 %1031 }
0x1b8f   :  { %1500 = vmatmul.msk.bf16.vlgmr.msra.gmra.mxu0 %vm226_vm3, %v1032_v13 }
0x1c0c   :  { %v1045_v14 = vpop.f32.mrf.mxu0 }
0x1c0d   :  { %v1050_v15 = vrot.slane %v1045_v14, 5 }
0x1c0f   :  { %v1052_v16 = vadd.f32 %v1050_v15, %v2106_v50 }
0x1c11   :  { %1625 = vtanh.f32 %v1052_v16  ;;  %v1501_v19 = vmul.f32 -1.442695, %v1052_v16 }
0x1c13   :  { %1627 = vpow2.f32 %v1501_v19 }
0x1c14   :  { %v1047_v17 = vpop.f32.mrf.mxu0 }
0x1c17   :  { %v1626_v18 = vpop.eup %1625 }
0x1c18   :  { %1078 = vrot.lane.b32.xlu2 %v1626_v18, %s1869_s2 }
0x1c19   :  { %v1628_v10 = vpop.eup %1627 }
0x1c1a   :  { %v1056_v20 = vadd.f32 1.0, %v1628_v10 }
0x1c1c   :  { %1629 = vrcp.f32 %v1056_v20  ;;  %v1068_v28 = vand.u32 2147483648, %v1056_v20  ;;  %vm1062_vm0 = vweird.f32 %v1056_v20  ;;  %v1066_v21 = vand.u32 2147483647, %v1056_v20 }
0x1c1e   :  { %v1069_v22 = vor.u32 1.1754944e-38, %v1068_v28  ;;  %vm1067_vm13 = vcmp.eq.f32.partialorder %v1066_v21, 8.507059e+37 }
0x1c22   :  { %v1630_v23 = vpop.eup %1629 }
0x1c23   :  { %v1058_v24 = vmul.f32 %v1630_v23, %v1056_v20  ;;  %vm1063_vm1 = vweird.f32 %v1630_v23 }
0x1c24   :  { %vm1064_vm11 = vmor %vm1062_vm0, %vm1063_vm1 }
0x1c25   :  { %v1059_v25 = vsub.f32 1.0, %v1058_v24 }
0x1c27   :  { %v1060_v26 = vmul.f32 %v1630_v23, %v1059_v25 }
0x1c29   :  { %v1061_v27 = vadd.f32 %v1630_v23, %v1060_v26 }
0x1c2b   :  { %v1065_v29 = vsel %vm1064_vm11, %v1630_v23, %v1061_v27 }
0x1c2c   :  { %v1070_v40 = vsel %vm1067_vm13, %v1069_v22, %v1065_v29 }
0x1c2d   :  { %v1076_v33 = vmul.f32 %v1074_v32, %v1070_v40 }
0x1c72   :  { %v1079_v30 = vpop.permute.xlu2 %1078 }
0x1c73   :  { %v1081_v31 = vmul.f32 %v1079_v30, %v1070_v40 }
0x1c75   :  { %1083 = vrot.lane.b32.xlu0 %v1081_v31, %s1879_s8 }
0x1ce7   :  { %v1084_v34 = vpop.permute.xlu0 %1083 }
0x1ce8   :  { %v1086_v35 = vadd.f32 %v1084_v34, %v1076_v33 }
0x1cea   :  { %1631 = vtanh.f32 %v1086_v35  ;;  %v1141_v3 = vrot.slane %v1086_v35, 7 }
0x1cf0   :  { %v1632_v36 = vpop.eup %1631 }
0x1cf1   :  { %1089 = vrot.lane.b32.xlu1 %v1632_v36, %s1869_s2 }
0x1d63   :  { %v1090_v39 = vpop.permute.xlu1 %1089 }
0x1d64   :  { %v1092_v41 = vmul.f32 %v1090_v39, %v1070_v40 }
0x1d66   :  { %v1093_v42 = vpack.c.bf16 %v1092_v41, %v1092_v41  ;;  %v1372_v43 = vsel %vm1360_vm7, %v1371_v11, %v1092_v41 }
0x1d68   :  { %v1095_v44 = vshrl.u32 %v1093_v42, 16 }
0x1d6a   :  { %v1097_v45 = vrot.slane %v1095_v44, 1 }
0x1d6c   :  { %1098 = vrot.lane.b32.xlu2 %v1097_v45, %s1879_s8 }
0x1dc6   :  { %v1099_v47 = vpop.permute.xlu2 %1098 }
0x1dc7   :  { %1502 = vmatmul.msk.bf16.vlgmr.msra.gmra.mxu1 %vm226_vm3, %v1099_v47 }
0x1e44   :  { %v1112_v48 = vpop.f32.mrf.mxu1 }
0x1e45   :  { %v1117_v49 = vrot.slane %v1112_v48, 4 }
0x1e47   :  { %v1119_v51 = vadd.f32 %v1117_v49, %v2106_v50 }
0x1e49   :  { %1633 = vtanh.f32 %v1119_v51  ;;  %v1503_v54 = vmul.f32 -1.442695, %v1119_v51 }
0x1e4b   :  { %1635 = vpow2.f32 %v1503_v54 }
0x1e4c   :  { %v1114_v52 = vpop.f32.mrf.mxu1 }
0x1e4f   :  { %v1634_v53 = vpop.eup %1633 }
0x1e50   :  { %1145 = vrot.lane.b32.xlu0 %v1634_v53, %s1869_s2 }
0x1e51   :  { %v1636_v55 = vpop.eup %1635 }
0x1e52   :  { %v1123_v56 = vadd.f32 1.0, %v1636_v55 }
0x1e54   :  { %1637 = vrcp.f32 %v1123_v56  ;;  %v1135_v61 = vand.u32 2147483648, %v1123_v56  ;;  %vm1129_vm14 = vweird.f32 %v1123_v56  ;;  %v1133_v38 = vand.u32 2147483647, %v1123_v56 }
0x1e56   :  { %v1136_v62 = vor.u32 1.1754944e-38, %v1135_v61  ;;  %vm1134_vm5 = vcmp.eq.f32.partialorder %v1133_v38, 8.507059e+37 }
0x1e5a   :  { %v1638_v57 = vpop.eup %1637 }
0x1e5b   :  { %v1125_v58 = vmul.f32 %v1638_v57, %v1123_v56  ;;  %vm1130_vm7 = vweird.f32 %v1638_v57 }
0x1e5c   :  { %vm1131_vm15 = vmor %vm1129_vm14, %vm1130_vm7 }
0x1e5d   :  { %v1126_v59 = vsub.f32 1.0, %v1125_v58 }
0x1e5f   :  { %v1127_v60 = vmul.f32 %v1638_v57, %v1126_v59 }
0x1e61   :  { %v1128_v37 = vadd.f32 %v1638_v57, %v1127_v60 }
0x1e63   :  { %v1132_v6 = vsel %vm1131_vm15, %v1638_v57, %v1128_v37 }
0x1e64   :  { %v1137_v1 = vsel %vm1134_vm5, %v1136_v62, %v1132_v6 }
0x1e65   :  { %v1143_v4 = vmul.f32 %v1141_v3, %v1137_v1 }
0x1ec2   :  { %v1146_v0 = vpop.permute.xlu0 %1145 }
0x1ec3   :  { %v1148_v2 = vmul.f32 %v1146_v0, %v1137_v1 }
0x1ec5   :  { %1150 = vrot.lane.b32.xlu1 %v1148_v2, %s1879_s8 }
0x1f37   :  { %v1151_v5 = vpop.permute.xlu1 %1150 }
0x1f38   :  { %v1153_v7 = vadd.f32 %v1151_v5, %v1143_v4 }
0x1f3a   :  { %1639 = vtanh.f32 %v1153_v7  ;;  %v1206_v33 = vrot.slane %v1153_v7, 7 }
0x1f40   :  { %v1640_v8 = vpop.eup %1639 }
0x1f41   :  { %1156 = vrot.lane.b32.xlu2 %v1640_v8, %s1869_s2 }
0x1f9b   :  { %v1157_v9 = vpop.permute.xlu2 %1156 }
0x1f9c   :  { %v1159_v63 = vmul.f32 %v1157_v9, %v1137_v1 }
0x1f9e   :  { %v1160_v11 = vpack.c.bf16 %v1159_v63, %v1159_v63  ;;  %v1373_v12 = vsel %vm1362_vm12, %v1372_v43, %v1159_v63 }
0x1fa0   :  { %v1162_v13 = vrot.slane %v1160_v11, 2 }
0x1fa2   :  { %1163 = vrot.lane.b32.xlu0 %v1162_v13, %s1879_s8 }
0x2014   :  { %v1164_v14 = vpop.permute.xlu0 %1163 }
0x2015   :  { %1504 = vmatmul.msk.bf16.vlgmr.msra.gmra.mxu3 %vm226_vm3, %v1164_v14 }
0x2098   :  { %v1177_v15 = vpop.f32.mrf.mxu3 }
0x2099   :  { %v1182_v16 = vrot.slane %v1177_v15, 3 }
0x209b   :  { %v1184_v17 = vadd.f32 %v1182_v16, %v2106_v50 }
0x209d   :  { %1641 = vtanh.f32 %v1184_v17  ;;  %v1505_v10 = vmul.f32 -1.442695, %v1184_v17 }
0x209f   :  { %1643 = vpow2.f32 %v1505_v10 }
0x20a0   :  { %v1179_v18 = vpop.f32.mrf.mxu3 }
0x20a3   :  { %v1642_v19 = vpop.eup %1641 }
0x20a4   :  { %1210 = vrot.lane.b32.xlu1 %v1642_v19, %s1869_s2 }
0x20a5   :  { %v1644_v20 = vpop.eup %1643 }
0x20a6   :  { %v1188_v23 = vadd.f32 1.0, %v1644_v20 }
0x20a8   :  { %1645 = vrcp.f32 %v1188_v23  ;;  %v1200_v21 = vand.u32 2147483648, %v1188_v23  ;;  %vm1194_vm6 = vweird.f32 %v1188_v23  ;;  %v1198_v29 = vand.u32 2147483647, %v1188_v23 }
0x20aa   :  { %v1201_v30 = vor.u32 1.1754944e-38, %v1200_v21  ;;  %vm1199_vm9 = vcmp.eq.f32.partialorder %v1198_v29, 8.507059e+37 }
0x20ae   :  { %v1646_v24 = vpop.eup %1645 }
0x20af   :  { %v1190_v25 = vmul.f32 %v1646_v24, %v1188_v23  ;;  %vm1195_vm12 = vweird.f32 %v1646_v24 }
0x20b0   :  { %vm1196_vm8 = vmor %vm1194_vm6, %vm1195_vm12 }
0x20b1   :  { %v1191_v26 = vsub.f32 1.0, %v1190_v25  ;;  %v1380_v25 = vld [vmem:[#allocation13 + $0x18] sm:$0xff] }
0x20b2   :  { %1407 = vmatpush.msrb.mxu1 %v1380_v25 }
0x20b3   :  { %v1192_v27 = vmul.f32 %v1646_v24, %v1191_v26  ;;  %v1379_v26 = vld [vmem:[#allocation13 + $0x10] sm:$0xff] }
0x20b4   :  { %1408 = vmatpush.msrb.mxu1 %v1379_v26 }
0x20b5   :  { %v1193_v28 = vadd.f32 %v1646_v24, %v1192_v27  ;;  %v1378_v27 = vld [vmem:[#allocation13 + $0x8] sm:$0xff] }
0x20b6   :  { %1409 = vmatpush.msrb.mxu1 %v1378_v27 }
0x20b7   :  { %v1197_v22 = vsel %vm1196_vm8, %v1646_v24, %v1193_v28  ;;  %v1377_v28 = vld [vmem:[#allocation13] sm:$0xff] }
0x20b8   :  { %v1202_v31 = vsel %vm1199_vm9, %v1201_v30, %v1197_v22  ;;  %1410 = vmatpush.msrb.mxu1 %v1377_v28 }
0x20b9   :  { %v1208_v34 = vmul.f32 %v1206_v33, %v1202_v31 }
0x2116   :  { %v1211_v40 = vpop.permute.xlu1 %1210 }
0x2117   :  { %v1213_v32 = vmul.f32 %v1211_v40, %v1202_v31 }
0x2119   :  { %1215 = vrot.lane.b32.xlu2 %v1213_v32, %s1879_s8 }
0x2173   :  { %v1216_v35 = vpop.permute.xlu2 %1215 }
0x2174   :  { %v1218_v36 = vadd.f32 %v1216_v35, %v1208_v34 }
0x2176   :  { %1647 = vtanh.f32 %v1218_v36  ;;  %v1273_v4 = vrot.slane %v1218_v36, 7 }
0x217c   :  { %v1648_v39 = vpop.eup %1647 }
0x217d   :  { %1221 = vrot.lane.b32.xlu0 %v1648_v39, %s1869_s2 }
0x21ef   :  { %v1222_v41 = vpop.permute.xlu0 %1221 }
0x21f0   :  { %v1224_v42 = vmul.f32 %v1222_v41, %v1202_v31 }
0x21f2   :  { %v1225_v43 = vpack.c.bf16 %v1224_v42, %v1224_v42  ;;  %v1374_v44 = vsel %vm1364_vm4, %v1373_v12, %v1224_v42 }
0x21f4   :  { %v1227_v45 = vshrl.u32 %v1225_v43, 16 }
0x21f6   :  { %v1229_v47 = vrot.slane %v1227_v45, 2  ;;  %v1536_v45 = vld [vmem:[%s2191_s11] ss:$0 sm:$0xff] }
0x21f8   :  { %1230 = vrot.lane.b32.xlu1 %v1229_v47, %s1879_s8 }
0x226a   :  { %v1231_v48 = vpop.permute.xlu1 %1230 }
0x226b   :  { %1506 = vmatmul.msk.bf16.vlgmr.msra.gmra.mxu2 %vm226_vm3, %v1231_v48 }
0x22ee   :  { %v1244_v49 = vpop.f32.mrf.mxu2 }
0x22ef   :  { %v1249_v51 = vrot.slane %v1244_v49, 2 }
0x22f1   :  { %v1251_v52 = vadd.f32 %v1249_v51, %v2106_v50 }
0x22f3   :  { %1649 = vtanh.f32 %v1251_v52  ;;  %v1507_v55 = vmul.f32 -1.442695, %v1251_v52 }
0x22f5   :  { %1651 = vpow2.f32 %v1507_v55 }
0x22f6   :  { %v1246_v53 = vpop.f32.mrf.mxu2 }
0x22f9   :  { %v1650_v54 = vpop.eup %1649 }
0x22fa   :  { %1277 = vrot.lane.b32.xlu2 %v1650_v54, %s1869_s2 }
0x22fb   :  { %v1652_v56 = vpop.eup %1651 }
0x22fc   :  { %v1255_v57 = vadd.f32 1.0, %v1652_v56 }
0x22fe   :  { %1653 = vrcp.f32 %v1255_v57  ;;  %v1267_v38 = vand.u32 2147483648, %v1255_v57  ;;  %vm1261_vm1 = vweird.f32 %v1255_v57  ;;  %v1265_v6 = vand.u32 2147483647, %v1255_v57 }
0x2300   :  { %v1268_v0 = vor.u32 1.1754944e-38, %v1267_v38  ;;  %vm1266_vm11 = vcmp.eq.f32.partialorder %v1265_v6, 8.507059e+37 }
0x2304   :  { %v1654_v58 = vpop.eup %1653 }
0x2305   :  { %v1257_v59 = vmul.f32 %v1654_v58, %v1255_v57  ;;  %vm1262_vm4 = vweird.f32 %v1654_v58 }
0x2306   :  { %vm1263_vm0 = vmor %vm1261_vm1, %vm1262_vm4 }
0x2307   :  { %v1258_v60 = vsub.f32 1.0, %v1257_v59 }
0x2309   :  { %v1259_v37 = vmul.f32 %v1654_v58, %v1258_v60 }
0x230b   :  { %v1260_v61 = vadd.f32 %v1654_v58, %v1259_v37 }
0x230d   :  { %v1264_v62 = vsel %vm1263_vm0, %v1654_v58, %v1260_v61 }
0x230e   :  { %v1269_v2 = vsel %vm1266_vm11, %v1268_v0, %v1264_v62 }
0x230f   :  { %v1275_v5 = vmul.f32 %v1273_v4, %v1269_v2 }
0x2354   :  { %v1278_v1 = vpop.permute.xlu2 %1277 }
0x2355   :  { %v1280_v3 = vmul.f32 %v1278_v1, %v1269_v2 }
0x2357   :  { %1282 = vrot.lane.b32.xlu0 %v1280_v3, %s1879_s8 }
0x23c9   :  { %v1283_v7 = vpop.permute.xlu0 %1282 }
0x23ca   :  { %v1285_v8 = vadd.f32 %v1283_v7, %v1275_v5 }
0x23cc   :  { %1655 = vtanh.f32 %v1285_v8  ;;  %v1338_v39 = vrot.slane %v1285_v8, 7 }
0x23d2   :  { %v1656_v9 = vpop.eup %1655 }
0x23d3   :  { %1288 = vrot.lane.b32.xlu1 %v1656_v9, %s1869_s2 }
0x2445   :  { %v1289_v63 = vpop.permute.xlu1 %1288 }
0x2446   :  { %v1291_v11 = vmul.f32 %v1289_v63, %v1269_v2 }
0x2448   :  { %v1292_v12 = vpack.c.bf16 %v1291_v11, %v1291_v11  ;;  %v1375_v13 = vsel %vm1366_vm10, %v1374_v44, %v1291_v11 }
0x244a   :  { %v1294_v14 = vrot.slane %v1292_v12, 3 }
0x244c   :  { %1295 = vrot.lane.b32.xlu2 %v1294_v14, %s1879_s8 }
0x24a6   :  { %v1296_v15 = vpop.permute.xlu2 %1295 }
0x24a7   :  { %1508 = vmatmul.msk.bf16.vlgmr.msrb.gmra.mxu0 %vm226_vm3, %v1296_v15 }
0x2524   :  { %v1309_v16 = vpop.f32.mrf.mxu0 }
0x2525   :  { %v1314_v17 = vrot.slane %v1309_v16, 1 }
0x2527   :  { %v1316_v18 = vadd.f32 %v1314_v17, %v2106_v50 }
0x2529   :  { %1657 = vtanh.f32 %v1316_v18  ;;  %v1509_v20 = vmul.f32 -1.442695, %v1316_v18 }
0x252b   :  { %1659 = vpow2.f32 %v1509_v20 }
0x252c   :  { %v1311_v19 = vpop.f32.mrf.mxu0 }
0x252f   :  { %v1658_v10 = vpop.eup %1657 }
0x2530   :  { %1342 = vrot.lane.b32.xlu0 %v1658_v10, %s1869_s2 }
0x2531   :  { %v1660_v23 = vpop.eup %1659 }
0x2532   :  { %v1320_v24 = vadd.f32 1.0, %v1660_v23 }
0x2534   :  { %1661 = vrcp.f32 %v1320_v24  ;;  %vm1326_vm13 = vweird.f32 %v1320_v24  ;;  %v1330_v40 = vand.u32 2147483647, %v1320_v24 }
0x2536   :  { %vm1331_vm14 = vcmp.eq.f32.partialorder %v1330_v40, 8.507059e+37 }
0x2538   :  { %1387 = vrot.lane.b32.xlu0 %v2099_v46, %s1879_s8  ;;  %v1332_v46 = vand.u32 2147483648, %v1320_v24 }
0x253a   :  { %v1662_v50 = vpop.eup %1661  ;;  %v1333_v32 = vor.u32 1.1754944e-38, %v1332_v46 }
0x253b   :  { %v1322_v21 = vmul.f32 %v1662_v50, %v1320_v24  ;;  %vm1327_vm10 = vweird.f32 %v1662_v50 }
0x253c   :  { %vm1328_vm7 = vmor %vm1326_vm13, %vm1327_vm10 }
0x253d   :  { %v1323_v29 = vsub.f32 1.0, %v1322_v21 }
0x253f   :  { %v1324_v22 = vmul.f32 %v1662_v50, %v1323_v29 }
0x2541   :  { %v1325_v30 = vadd.f32 %v1662_v50, %v1324_v22 }
0x2543   :  { %v1329_v31 = vsel %vm1328_vm7, %v1662_v50, %v1325_v30 }
0x2544   :  { %v1334_v34 = vsel %vm1331_vm14, %v1333_v32, %v1329_v31 }
0x2545   :  { %v1340_v41 = vmul.f32 %v1338_v39, %v1334_v34 }
0x25a2   :  { %v1343_v33 = vpop.permute.xlu0 %1342 }
0x25a3   :  { %v1345_v35 = vmul.f32 %v1343_v33, %v1334_v34 }
0x25a5   :  { %1347 = vrot.lane.b32.xlu1 %v1345_v35, %s1879_s8 }
0x25aa   :  { %v1388_v36 = vpop.permute.xlu0 %1387 }
0x25ab   :  { %1510 = vmatmul.msk.f32.vlgmr.msrb.gmra.mxu1 %vm226_vm3, %v1388_v36 }
0x2617   :  { %v1348_v42 = vpop.permute.xlu1 %1347 }
0x2618   :  { %v1350_v43 = vadd.f32 %v1348_v42, %v1340_v41 }
0x261a   :  { %1663 = vtanh.f32 %v1350_v43 }
0x2620   :  { %v1664_v44 = vpop.eup %1663 }
0x2621   :  { %1353 = vrot.lane.b32.xlu2 %v1664_v44, %s1869_s2 }
0x2628   :  { %v1412_v47 = vpop.f32.mrf.mxu1 }
0x2629   :  { %v1413_v48 = vadd.f32 %v1536_v45, %v1412_v47 }
0x262b   :  { %1418 = vst [vmem:[#allocation14] sm:$0xff] %v1413_v48 }
0x267b   :  { %v1354_v49 = vpop.permute.xlu2 %1353 }
0x267c   :  { %v1356_v51 = vmul.f32 %v1354_v49, %v1334_v34 }
0x267e   :  { %v1376_v52 = vsel %vm1368_vm2, %v1375_v13, %v1356_v51 }
0x267f   :  { %1389 = vrot.lane.b32.xlu1 %v1376_v52, %s1879_s8 }
0x26f1   :  { %v1390_v53 = vpop.permute.xlu1 %1389 }
0x26f2   :  { %1511 = vmatmul.msk.f32.gmra.mxu1 %vm226_vm3, %v1390_v53 }
0x276f   :  { %v1415_v54 = vpop.f32.mrf.mxu1 }
0x2770   :  { %v1416_v55 = vadd.f32 %v1536_v45, %v1415_v54 }
0x2772   :  { %1419 = vst [vmem:[#allocation14 + $0x8] sm:$0xff] %v1416_v55 }
0x2773   :  { %1432 = dma.vmem_to_hbm [thread:$0]  %s1425_s25, 256, %s1427_s26, [#allocation4], %s1876_s17, %s1876_s17, %s1877_s18  }
0x2774   :  { %1865 = dma.done.wait [#allocation4], 256  }
0x2775   :  { %1866 = vsyncadd [#allocation4], 4294967040 }
0x2776   :  { %1437 = vsyncpa [#allocation3], 1 }
0x2777   :  { %1438 = vsyncpa [#allocation6], 1 }
0x2778   :  { %1439 = vsyncpa [#allocation9], 1 }
0x2779   :  { %1440 = vsyncpa [#allocation12], 1 }
0x277a   :  { %1441 = vsyncpa [#allocation4], 1 }

</bundles_post_ra>
